<compile_context>
chip_gen: v5e
topology: v5e:2x2
jax: 0.10.0
libtpu: 0.0.40
codegen_flags: <defaults>
</compile_context>

<pallas_src>
import functools

import jax
import jax.numpy as jnp
from jax.experimental import pallas as pl
from jax.experimental.pallas import tpu as pltpu


K_IN = 28 * 28        # 784
N_OUT = 10
N_OUT_PAD = 128       # lane-dense padded output width (unmasked vst)
DIMS = [(K_IN, 512), (512, 128), (128, 64), (64, N_OUT)]


def _round_up(n, m):
    return ((n + m - 1) // m) * m


def mlp_kernel(x_ref,
               w1_ref, b1_ref,
               w2_ref, b2_ref,
               w3_ref, b3_ref,
               w4_ref, b4_ref,
               out_ref):
    """One batch tile of the whole MLP: 4 bf16 MXU matmuls with f32
    accumulation; bias-add / ReLU on the VPU in f32."""
    # x is streamed as f32 [TB, 784]; cast to bf16 in-kernel (cheap VPU op,
    # avoids an extra HBM round-trip for a padded bf16 copy of the input).
    x = x_ref[...].astype(jnp.bfloat16)                                # [TB, 784] bf16

    h = jnp.dot(x, w1_ref[...], preferred_element_type=jnp.float32)   # [TB, 512] f32
    h = jnp.maximum(h + b1_ref[...], 0.0).astype(jnp.bfloat16)

    h = jnp.dot(h, w2_ref[...], preferred_element_type=jnp.float32)   # [TB, 128] f32
    h = jnp.maximum(h + b2_ref[...], 0.0).astype(jnp.bfloat16)

    h = jnp.dot(h, w3_ref[...], preferred_element_type=jnp.float32)   # [TB, 64] f32
    h = jnp.maximum(h + b3_ref[...], 0.0).astype(jnp.bfloat16)

    h = jnp.dot(h, w4_ref[...], preferred_element_type=jnp.float32)   # [TB, 128] f32
    out_ref[...] = (h + b4_ref[...]).astype(jnp.bfloat16)             # lane-dense bf16 store


def prepare_params(params):
    """One-time layout plumbing: bf16 weights, f32 biases, 10->128 head pad.

    Call once (outside the per-step forward) and reuse the result; this keeps
    the per-call graph free of constant pad/cast kernels."""
    (w1, b1), (w2, b2), (w3, b3), (w4, b4) = params
    w1p = w1.astype(jnp.bfloat16)                                           # [784, 512]
    w2p = w2.astype(jnp.bfloat16)                                           # [512, 128]
    w3p = w3.astype(jnp.bfloat16)                                           # [128, 64]
    w4p = jnp.zeros((64, N_OUT_PAD), jnp.bfloat16).at[:, :N_OUT].set(
        w4.astype(jnp.bfloat16))                                            # [64, 128]
    b1p = b1.reshape(1, -1).astype(jnp.float32)
    b2p = b2.reshape(1, -1).astype(jnp.float32)
    b3p = b3.reshape(1, -1).astype(jnp.float32)
    b4p = jnp.zeros((1, N_OUT_PAD), jnp.float32).at[:, :N_OUT].set(
        b4.reshape(1, -1).astype(jnp.float32))
    return (w1p, b1p, w2p, b2p, w3p, b3p, w4p, b4p)


def mlp_forward(x, prepared, *, batch_tile=512):
    """x: [B, 784] (or [B, 1, 28, 28]) f32; prepared: output of prepare_params.

    Returns [B, 10] f32 logits."""
    B = x.shape[0]
    x = x.reshape(B, K_IN).astype(jnp.float32)

    # Tile the batch. Default 512 rows/step amortizes the ~0.35 us/grid-step
    # overhead; shrink for tiny batches (second-to-last block dim must be a
    # multiple of 8). Total VMEM at TB=1024 is ~12 MB -> fits every
    # generation's scoped default, so no vmem_limit_bytes override needed.
    TB = min(batch_tile, _round_up(B, 8))
    B_pad = _round_up(B, TB)
    nb = B_pad // TB
    if B_pad != B:
        x = jnp.pad(x, ((0, B_pad - B), (0, 0)))

    w1p, b1p, w2p, b2p, w3p, b3p, w4p, b4p = prepared

    def rowblk(i):      # x / out: walk the batch tiles
        return (i, 0)

    def pinned(i):      # weights / biases: same block every step -> VMEM-resident
        return (0, 0)

    flops = 2 * B_pad * (K_IN * 512 + 512 * 128 + 128 * 64 + 64 * N_OUT_PAD)
    bytes_accessed = (
        B_pad * K_IN * 4                                            # x (f32 in)
        + (w1p.size + w2p.size + w3p.size + w4p.size) * 2           # bf16 weights
        + (b1p.size + b2p.size + b3p.size + b4p.size) * 4           # f32 biases
        + B_pad * N_OUT_PAD * 2                                     # bf16 out
    )

    out = pl.pallas_call(
        mlp_kernel,
        out_shape=jax.ShapeDtypeStruct((B_pad, N_OUT_PAD), jnp.bfloat16),
        grid=(nb,),
        in_specs=[
            # Full-extent 784 last dim is legal (block dim == array dim);
            # Mosaic pads the contraction internally.
            pl.BlockSpec((TB, K_IN), rowblk),
            pl.BlockSpec(w1p.shape, pinned),
            pl.BlockSpec(b1p.shape, pinned),
            pl.BlockSpec(w2p.shape, pinned),
            pl.BlockSpec(b2p.shape, pinned),
            pl.BlockSpec(w3p.shape, pinned),
            pl.BlockSpec(b3p.shape, pinned),
            pl.BlockSpec(w4p.shape, pinned),
            pl.BlockSpec(b4p.shape, pinned),
        ],
        out_specs=pl.BlockSpec((TB, N_OUT_PAD), rowblk),
        compiler_params=pltpu.CompilerParams(
            dimension_semantics=("parallel",),
        ),
        cost_estimate=pl.CostEstimate(
            flops=flops, transcendentals=0, bytes_accessed=bytes_accessed),
    )(x, w1p, b1p, w2p, b2p, w3p, b3p, w4p, b4p)

    # Strip batch padding and the 10->128 lane padding of the head; f32 logits.
    return out[:B, :N_OUT].astype(jnp.float32)


def init_params(key):
    """Deterministic init matching nn.Linear shapes (Kaiming-uniform-ish)."""
    params = []
    for fan_in, fan_out in DIMS:
        kw, kb, key = jax.random.split(key, 3)
        bound = 1.0 / jnp.sqrt(fan_in)
        w = jax.random.uniform(kw, (fan_in, fan_out), jnp.float32, -bound, bound)
        b = jax.random.uniform(kb, (1, fan_out), jnp.float32, -bound, bound)
        params.append((w, b))
    return params


def reference_forward(x, params):
    """Pure-JAX reference with the same bf16-in / f32-accumulate numerics."""
    h = x.reshape(x.shape[0], K_IN).astype(jnp.bfloat16)
    acc = None
    for i, (w, b) in enumerate(params):
        acc = jnp.dot(h, w.astype(jnp.bfloat16),
                      preferred_element_type=jnp.float32) + b.reshape(1, -1)
        if i < len(params) - 1:
            h = jnp.maximum(acc, 0.0).astype(jnp.bfloat16)
    # Kernel stores bf16 logits; match its rounding for the comparison.
    return acc.astype(jnp.bfloat16).astype(jnp.float32)


if __name__ == "__main__":
    key = jax.random.PRNGKey(0)
    kx, kp = jax.random.split(key)

    B = 8
    # PyTorch input would be [B, 1, 28, 28]; the model consumes it flattened.
    x_img = jax.random.normal(kx, (B, 1, 28, 28), jnp.float32)
    x = x_img.reshape(B, K_IN)

    params = init_params(kp)
    prepared = prepare_params(params)          # one-time weight prep (hoisted)

    fwd = jax.jit(functools.partial(mlp_forward, batch_tile=512))
    out = fwd(x, prepared)
    out = jax.block_until_ready(out)

    ref = reference_forward(x, params)
    assert out.shape == (B, N_OUT), out.shape
    assert jnp.allclose(out, ref, atol=1e-2, rtol=1e-2), "mismatch vs reference"

    print("KERNEL_OK")
</pallas_src>

<mosaic_0001>
module attributes {stable_mosaic.version = 11 : i64} {
  func.func @mlp_kernel(%arg0: i32, %arg1: memref<8x784xf32, #tpu.memory_space<vmem>>, %arg2: memref<784x512xbf16, #tpu.memory_space<vmem>>, %arg3: memref<1x512xf32, #tpu.memory_space<vmem>>, %arg4: memref<512x128xbf16, #tpu.memory_space<vmem>>, %arg5: memref<1x128xf32, #tpu.memory_space<vmem>>, %arg6: memref<128x64xbf16, #tpu.memory_space<vmem>>, %arg7: memref<1x64xf32, #tpu.memory_space<vmem>>, %arg8: memref<64x128xbf16, #tpu.memory_space<vmem>>, %arg9: memref<1x128xf32, #tpu.memory_space<vmem>>, %arg10: memref<8x128xbf16, #tpu.memory_space<vmem>>) attributes {dimension_semantics = [#tpu.dimension_semantics<parallel>], iteration_bounds = array<i64: 1>, scalar_prefetch = 0 : i64, scratch_operands = 0 : i64, tpu.core_type = #tpu.core_type<tc>, window_params = [{transform_indices = @transform_0, window_bounds = array<i64: 8, 784>}, {pipeline_mode = #tpu.pipeline_mode<synchronous>, transform_indices = @transform_1, window_bounds = array<i64: 784, 512>}, {pipeline_mode = #tpu.pipeline_mode<synchronous>, transform_indices = @transform_2, window_bounds = array<i64: 1, 512>}, {pipeline_mode = #tpu.pipeline_mode<synchronous>, transform_indices = @transform_3, window_bounds = array<i64: 512, 128>}, {pipeline_mode = #tpu.pipeline_mode<synchronous>, transform_indices = @transform_4, window_bounds = array<i64: 1, 128>}, {pipeline_mode = #tpu.pipeline_mode<synchronous>, transform_indices = @transform_5, window_bounds = array<i64: 128, 64>}, {pipeline_mode = #tpu.pipeline_mode<synchronous>, transform_indices = @transform_6, window_bounds = array<i64: 1, 64>}, {pipeline_mode = #tpu.pipeline_mode<synchronous>, transform_indices = @transform_7, window_bounds = array<i64: 64, 128>}, {pipeline_mode = #tpu.pipeline_mode<synchronous>, transform_indices = @transform_8, window_bounds = array<i64: 1, 128>}, {transform_indices = @transform_9, window_bounds = array<i64: 8, 128>}]} {
    %c0 = arith.constant 0 : index
    %c0_0 = arith.constant 0 : index
    %0 = vector.load %arg1[%c0, %c0_0] : memref<8x784xf32, #tpu.memory_space<vmem>>, vector<8x784xf32>
    %1 = arith.truncf %0 : vector<8x784xf32> to vector<8x784xbf16>
    %c0_1 = arith.constant 0 : index
    %c0_2 = arith.constant 0 : index
    %2 = vector.load %arg2[%c0_1, %c0_2] : memref<784x512xbf16, #tpu.memory_space<vmem>>, vector<784x512xbf16>
    %cst = arith.constant dense<0.000000e+00> : vector<8x512xf32>
    %3 = tpu.matmul %1, %2, %cst {dimension_numbers = #tpu.dot_dimension_numbers<[1], [0], [0], [1], [0, 0, 1, 1], [], []>} : vector<8x784xbf16>, vector<784x512xbf16>, vector<8x512xf32> -> vector<8x512xf32>
    %c0_3 = arith.constant 0 : index
    %c0_4 = arith.constant 0 : index
    %4 = vector.load %arg3[%c0_3, %c0_4] : memref<1x512xf32, #tpu.memory_space<vmem>>, vector<1x512xf32>
    %5 = vector.broadcast %4 : vector<1x512xf32> to vector<8x512xf32>
    %6 = arith.addf %3, %5 : vector<8x512xf32>
    %cst_5 = arith.constant 0.000000e+00 : f32
    %7 = vector.broadcast %cst_5 : f32 to vector<8x512xf32>
    %8 = arith.maximumf %6, %7 : vector<8x512xf32>
    %9 = arith.truncf %8 : vector<8x512xf32> to vector<8x512xbf16>
    %c0_6 = arith.constant 0 : index
    %c0_7 = arith.constant 0 : index
    %10 = vector.load %arg4[%c0_6, %c0_7] : memref<512x128xbf16, #tpu.memory_space<vmem>>, vector<512x128xbf16>
    %cst_8 = arith.constant dense<0.000000e+00> : vector<8x128xf32>
    %11 = tpu.matmul %9, %10, %cst_8 {dimension_numbers = #tpu.dot_dimension_numbers<[1], [0], [0], [1], [0, 0, 1, 1], [], []>} : vector<8x512xbf16>, vector<512x128xbf16>, vector<8x128xf32> -> vector<8x128xf32>
    %c0_9 = arith.constant 0 : index
    %c0_10 = arith.constant 0 : index
    %12 = vector.load %arg5[%c0_9, %c0_10] : memref<1x128xf32, #tpu.memory_space<vmem>>, vector<1x128xf32>
    %13 = vector.broadcast %12 : vector<1x128xf32> to vector<8x128xf32>
    %14 = arith.addf %11, %13 : vector<8x128xf32>
    %cst_11 = arith.constant 0.000000e+00 : f32
    %15 = vector.broadcast %cst_11 : f32 to vector<8x128xf32>
    %16 = arith.maximumf %14, %15 : vector<8x128xf32>
    %17 = arith.truncf %16 : vector<8x128xf32> to vector<8x128xbf16>
    %c0_12 = arith.constant 0 : index
    %c0_13 = arith.constant 0 : index
    %18 = vector.load %arg6[%c0_12, %c0_13] : memref<128x64xbf16, #tpu.memory_space<vmem>>, vector<128x64xbf16>
    %cst_14 = arith.constant dense<0.000000e+00> : vector<8x64xf32>
    %19 = tpu.matmul %17, %18, %cst_14 {dimension_numbers = #tpu.dot_dimension_numbers<[1], [0], [0], [1], [0, 0, 1, 1], [], []>} : vector<8x128xbf16>, vector<128x64xbf16>, vector<8x64xf32> -> vector<8x64xf32>
    %c0_15 = arith.constant 0 : index
    %c0_16 = arith.constant 0 : index
    %20 = vector.load %arg7[%c0_15, %c0_16] : memref<1x64xf32, #tpu.memory_space<vmem>>, vector<1x64xf32>
    %21 = vector.broadcast %20 : vector<1x64xf32> to vector<8x64xf32>
    %22 = arith.addf %19, %21 : vector<8x64xf32>
    %cst_17 = arith.constant 0.000000e+00 : f32
    %23 = vector.broadcast %cst_17 : f32 to vector<8x64xf32>
    %24 = arith.maximumf %22, %23 : vector<8x64xf32>
    %25 = arith.truncf %24 : vector<8x64xf32> to vector<8x64xbf16>
    %c0_18 = arith.constant 0 : index
    %c0_19 = arith.constant 0 : index
    %26 = vector.load %arg8[%c0_18, %c0_19] : memref<64x128xbf16, #tpu.memory_space<vmem>>, vector<64x128xbf16>
    %cst_20 = arith.constant dense<0.000000e+00> : vector<8x128xf32>
    %27 = tpu.matmul %25, %26, %cst_20 {dimension_numbers = #tpu.dot_dimension_numbers<[1], [0], [0], [1], [0, 0, 1, 1], [], []>} : vector<8x64xbf16>, vector<64x128xbf16>, vector<8x128xf32> -> vector<8x128xf32>
    %c0_21 = arith.constant 0 : index
    %c0_22 = arith.constant 0 : index
    %28 = vector.load %arg9[%c0_21, %c0_22] : memref<1x128xf32, #tpu.memory_space<vmem>>, vector<1x128xf32>
    %29 = vector.broadcast %28 : vector<1x128xf32> to vector<8x128xf32>
    %30 = arith.addf %27, %29 : vector<8x128xf32>
    %31 = arith.truncf %30 : vector<8x128xf32> to vector<8x128xbf16>
    %c0_23 = arith.constant 0 : index
    %c0_24 = arith.constant 0 : index
    %32 = vector.load %arg10[%c0_23, %c0_24] : memref<8x128xbf16, #tpu.memory_space<vmem>>, vector<8x128xbf16>
    tpu.vector_store %arg10[%c0_23, %c0_24], %31 {strides = array<i32>} : memref<8x128xbf16, #tpu.memory_space<vmem>>, vector<8x128xbf16>,
    return
  }
  func.func @transform_0(%arg0: i32) -> (i32, i32) {
    %c0_i32 = arith.constant 0 : i32
    %c0_i32_0 = arith.constant 0 : i32
    return %arg0, %c0_i32 : i32, i32
  }
  func.func @transform_1(%arg0: i32) -> (i32, i32) {
    %c0_i32 = arith.constant 0 : i32
    %c0_i32_0 = arith.constant 0 : i32
    %c0_i32_1 = arith.constant 0 : i32
    return %c0_i32, %c0_i32_0 : i32, i32
  }
  func.func @transform_2(%arg0: i32) -> (i32, i32) {
    %c0_i32 = arith.constant 0 : i32
    %c0_i32_0 = arith.constant 0 : i32
    %c0_i32_1 = arith.constant 0 : i32
    return %c0_i32, %c0_i32_0 : i32, i32
  }
  func.func @transform_3(%arg0: i32) -> (i32, i32) {
    %c0_i32 = arith.constant 0 : i32
    %c0_i32_0 = arith.constant 0 : i32
    %c0_i32_1 = arith.constant 0 : i32
    return %c0_i32, %c0_i32_0 : i32, i32
  }
  func.func @transform_4(%arg0: i32) -> (i32, i32) {
    %c0_i32 = arith.constant 0 : i32
    %c0_i32_0 = arith.constant 0 : i32
    %c0_i32_1 = arith.constant 0 : i32
    return %c0_i32, %c0_i32_0 : i32, i32
  }
  func.func @transform_5(%arg0: i32) -> (i32, i32) {
    %c0_i32 = arith.constant 0 : i32
    %c0_i32_0 = arith.constant 0 : i32
    %c0_i32_1 = arith.constant 0 : i32
    return %c0_i32, %c0_i32_0 : i32, i32
  }
  func.func @transform_6(%arg0: i32) -> (i32, i32) {
    %c0_i32 = arith.constant 0 : i32
    %c0_i32_0 = arith.constant 0 : i32
    %c0_i32_1 = arith.constant 0 : i32
    return %c0_i32, %c0_i32_0 : i32, i32
  }
  func.func @transform_7(%arg0: i32) -> (i32, i32) {
    %c0_i32 = arith.constant 0 : i32
    %c0_i32_0 = arith.constant 0 : i32
    %c0_i32_1 = arith.constant 0 : i32
    return %c0_i32, %c0_i32_0 : i32, i32
  }
  func.func @transform_8(%arg0: i32) -> (i32, i32) {
    %c0_i32 = arith.constant 0 : i32
    %c0_i32_0 = arith.constant 0 : i32
    %c0_i32_1 = arith.constant 0 : i32
    return %c0_i32, %c0_i32_0 : i32, i32
  }
  func.func @transform_9(%arg0: i32) -> (i32, i32) {
    %c0_i32 = arith.constant 0 : i32
    %c0_i32_0 = arith.constant 0 : i32
    return %arg0, %c0_i32 : i32, i32
  }
}

</mosaic_0001>

<bundles_post_ra>
// kernel: mlp_forward.1
= control target key start
LH: loop header
LB: loop body
LE: loop exit
PB: predicated region body
PF: predicated region fallthrough
CT: control target
= control target key end

     0   :  { %14 = vsyncpa [#allocation3], 0  ;;  %s3563_s0 = inlined_call_operand.vmem [shape: f32[8,784], index: 0, kind: input, shape index: {}]   ;;  %s3564_s1 = inlined_call_operand.hbm [shape: bf16[784,512], index: 1, kind: input, shape index: {}]   ;;  %s3565_s2 = inlined_call_operand.vmem [shape: f32[1,512], index: 2, kind: input, shape index: {}]   ;;  %s3566_s3 = inlined_call_operand.hbm [shape: bf16[512,128], index: 3, kind: input, shape index: {}]   ;;  %s3567_s4 = inlined_call_operand.vmem [shape: f32[1,128], index: 4, kind: input, shape index: {}]   ;;  %s3568_s5 = inlined_call_operand.vmem [shape: bf16[128,64], index: 5, kind: input, shape index: {}]   ;;  %s3569_s6 = inlined_call_operand.vmem [shape: f32[1,64], index: 6, kind: input, shape index: {}]   ;;  %s3570_s7 = inlined_call_operand.vmem [shape: bf16[64,128], index: 7, kind: input, shape index: {}]   ;;  %s3571_s8 = inlined_call_operand.vmem [shape: f32[1,128], index: 8, kind: input, shape index: {}]   ;;  %s3572_s9 = inlined_call_operand.vmem [shape: bf16[8,128], index: 9, kind: output, shape index: {}]  }
   0x1   :  { %s22_s11 = sshll.u32 %s3564_s1, 4  ;;  %s23_s11 = int_to_ptr.hbm [resolvable:$true] %s22_s11 }
   0x2   :  { %15 = vsyncpa [#allocation5], 0  ;;  %s3365_s12 = smov [#allocation2]   ;;  %s37_s16 = sshll.u32 %s3566_s3, 4  ;;  %s38_s16 = int_to_ptr.hbm [resolvable:$true] %s37_s16 }
   0x3   :  { %s24_s13 = sshll.u32 %s3365_s12, 4  ;;  %s3366_s17 = smov 256   ;;  %s25_s13 = int_to_ptr.vmem [resolvable:$true] %s24_s13 }
   0x4   :  { %s3367_s18 = smov 16   ;;  %s3368_s19 = smov [#allocation4]  }
   0x5   :  { %30 = dma.hbm_to_vmem [thread:$0]  %s23_s11, 25088, %s25_s13, [#allocation3], %s3366_s17, %s3366_s17, %s3367_s18  }
   0x6   :  { %s39_s20 = sshll.u32 %s3368_s19, 4  ;;  %s3369_s21 = smov 64   ;;  %s40_s20 = int_to_ptr.vmem [resolvable:$true] %s39_s20 }
   0x7   :  { %s3370_s22 = smov 4  }
   0x8   :  { %45 = dma.hbm_to_vmem [thread:$0]  %s38_s16, 4096, %s40_s20, [#allocation5], %s3369_s21, %s3369_s21, %s3370_s22  }
   0x9   :  { %3361 = dma.done.wait [#allocation3], 25088  }
   0xa   :  { %3362 = vsyncadd [#allocation3], 4294942208 }
   0xb   :  { %3363 = dma.done.wait [#allocation5], 4096  }
   0xc   :  { %3364 = vsyncadd [#allocation5], 4294963200  ;;  %v2213_v0 = vld [vmem:[#allocation2 + $0xe0] sm:$0xf]  ;;  %v3094_v1 = vld [vmem:[#allocation2 + $0xec] sm:$0xf0] }
   0xd   :  { %v2341_v2 = vld [vmem:[#allocation2 + $0x1e0] sm:$0xf]  ;;  %v2214_v3 = vor.u32 %v3094_v1, %v2213_v0  ;;  %v3126_v4 = vld [vmem:[#allocation2 + $0x1ec] sm:$0xf0]  ;;  %vm1265_vm0 = vcmask 130048   ;;  %vm2074_vm1 = vcmask 523264  }
   0xe   :  { %v2469_v5 = vld [vmem:[#allocation2 + $0x2e0] sm:$0xf]  ;;  %v3158_v6 = vld [vmem:[#allocation2 + $0x2ec] sm:$0xf0]  ;;  %v2342_v7 = vor.u32 %v3126_v4, %v2341_v2 }
   0xf   :  { %v2470_v8 = vor.u32 %v3158_v6, %v2469_v5  ;;  %v2597_v9 = vld [vmem:[#allocation2 + $0x3e0] sm:$0xf]  ;;  %v3190_v10 = vld [vmem:[#allocation2 + $0x3ec] sm:$0xf0]  ;;  %1269 = vmatpush.bf16.msra.mxu0 %v2214_v3 }
  0x10   :  { %v2197_v11 = vld [vmem:[#allocation2 + $0xc0] sm:$0xf]  ;;  %v2598_v12 = vor.u32 %v3190_v10, %v2597_v9  ;;  %v3090_v13 = vld [vmem:[#allocation2 + $0xcc] sm:$0xf0]  ;;  %1282 = vmatpush.bf16.msra.mxu1 %v2342_v7 }
  0x11   :  { %v2325_v14 = vld [vmem:[#allocation2 + $0x1c0] sm:$0xf]  ;;  %v3122_v15 = vld [vmem:[#allocation2 + $0x1cc] sm:$0xf0]  ;;  %1295 = vmatpush.bf16.msra.mxu2 %v2470_v8  ;;  %v2198_v16 = vor.u32 %v3090_v13, %v2197_v11 }
  0x12   :  { %v2326_v17 = vor.u32 %v3122_v15, %v2325_v14  ;;  %v2453_v18 = vld [vmem:[#allocation2 + $0x2c0] sm:$0xf]  ;;  %v3154_v19 = vld [vmem:[#allocation2 + $0x2cc] sm:$0xf0]  ;;  %1308 = vmatpush.bf16.msra.mxu3 %v2598_v12 }
  0x13   :  { %v2581_v20 = vld [vmem:[#allocation2 + $0x3c0] sm:$0xf]  ;;  %v2454_v21 = vor.u32 %v3154_v19, %v2453_v18  ;;  %v3186_v22 = vld [vmem:[#allocation2 + $0x3cc] sm:$0xf0]  ;;  %1270 = vmatpush.bf16.msra.mxu0 %v2198_v16 }
  0x14   :  { %v2181_v23 = vld [vmem:[#allocation2 + $0xa0] sm:$0xf]  ;;  %v3086_v24 = vld [vmem:[#allocation2 + $0xac] sm:$0xf0]  ;;  %v2582_v25 = vor.u32 %v3186_v22, %v2581_v20  ;;  %1283 = vmatpush.bf16.msra.mxu1 %v2326_v17 }
  0x15   :  { %v2309_v26 = vld [vmem:[#allocation2 + $0x1a0] sm:$0xf]  ;;  %v3118_v27 = vld [vmem:[#allocation2 + $0x1ac] sm:$0xf0]  ;;  %v2182_v29 = vor.u32 %v3086_v24, %v2181_v23  ;;  %1296 = vmatpush.bf16.msra.mxu2 %v2454_v21 }
  0x16   :  { %v2437_v28 = vld [vmem:[#allocation2 + $0x2a0] sm:$0xf]  ;;  %v3150_v30 = vld [vmem:[#allocation2 + $0x2ac] sm:$0xf0]  ;;  %v2310_v33 = vor.u32 %v3118_v27, %v2309_v26  ;;  %1309 = vmatpush.bf16.msra.mxu3 %v2582_v25 }
  0x17   :  { %v2565_v31 = vld [vmem:[#allocation2 + $0x3a0] sm:$0xf]  ;;  %v3182_v32 = vld [vmem:[#allocation2 + $0x3ac] sm:$0xf0]  ;;  %v2438_v34 = vor.u32 %v3150_v30, %v2437_v28  ;;  %1271 = vmatpush.bf16.msra.mxu0 %v2182_v29 }
  0x18   :  { %v2165_v35 = vld [vmem:[#allocation2 + $0x80] sm:$0xf]  ;;  %v3082_v36 = vld [vmem:[#allocation2 + $0x8c] sm:$0xf0]  ;;  %v2566_v38 = vor.u32 %v3182_v32, %v2565_v31  ;;  %1284 = vmatpush.bf16.msra.mxu1 %v2310_v33  ;;  %v3092_v33 = vld [vmem:[#allocation2 + $0xe4] sm:$0xf] }
  0x19   :  { %v2293_v37 = vld [vmem:[#allocation2 + $0x180] sm:$0xf]  ;;  %v3114_v39 = vld [vmem:[#allocation2 + $0x18c] sm:$0xf0]  ;;  %v2166_v44 = vor.u32 %v3082_v36, %v2165_v35  ;;  %1297 = vmatpush.bf16.msra.mxu2 %v2438_v34  ;;  %v2215_v34 = vld [vmem:[#allocation2 + $0xf0] sm:$0xf0] }
  0x1a   :  { %v2421_v40 = vld [vmem:[#allocation2 + $0x280] sm:$0xf]  ;;  %v3146_v41 = vld [vmem:[#allocation2 + $0x28c] sm:$0xf0]  ;;  %v2294_v45 = vor.u32 %v3114_v39, %v2293_v37  ;;  %1310 = vmatpush.bf16.msra.mxu3 %v2566_v38 }
  0x1b   :  { %v2549_v42 = vld [vmem:[#allocation2 + $0x380] sm:$0xf]  ;;  %v3178_v43 = vld [vmem:[#allocation2 + $0x38c] sm:$0xf0]  ;;  %v2422_v46 = vor.u32 %v3146_v41, %v2421_v40  ;;  %1272 = vmatpush.bf16.msra.mxu0 %v2166_v44  ;;  %v2343_v44 = vld [vmem:[#allocation2 + $0x1f0] sm:$0xf0] }
  0x1c   :  { %v2149_v47 = vld [vmem:[#allocation2 + $0x60] sm:$0xf]  ;;  %v3078_v48 = vld [vmem:[#allocation2 + $0x6c] sm:$0xf0]  ;;  %v2550_v50 = vor.u32 %v3178_v43, %v2549_v42  ;;  %1285 = vmatpush.bf16.msra.mxu1 %v2294_v45  ;;  %v3124_v43 = vld [vmem:[#allocation2 + $0x1e4] sm:$0xf] }
  0x1d   :  { %v2277_v49 = vld [vmem:[#allocation2 + $0x160] sm:$0xf]  ;;  %v3110_v51 = vld [vmem:[#allocation2 + $0x16c] sm:$0xf0]  ;;  %v2150_v56 = vor.u32 %v3078_v48, %v2149_v47  ;;  %1298 = vmatpush.bf16.msra.mxu2 %v2422_v46  ;;  %v68_v45 = vld [vmem:[%s3563_s0 + $0x18] sm:$0xff]  ;;  %v2218_v47 = vor.u32 %v3092_v33, %v2215_v34 }
  0x1e   :  { %v2405_v52 = vld [vmem:[#allocation2 + $0x260] sm:$0xf]  ;;  %v3142_v53 = vld [vmem:[#allocation2 + $0x26c] sm:$0xf0]  ;;  %v2278_v57 = vor.u32 %v3110_v51, %v2277_v49  ;;  %1311 = vmatpush.bf16.msra.mxu3 %v2550_v50 }
  0x1f   :  { %v2533_v54 = vld [vmem:[#allocation2 + $0x360] sm:$0xf]  ;;  %v3174_v55 = vld [vmem:[#allocation2 + $0x36c] sm:$0xf0]  ;;  %v2406_v58 = vor.u32 %v3142_v53, %v2405_v52  ;;  %1273 = vmatpush.bf16.msra.mxu0 %v2150_v56  ;;  %v3088_v53 = vld [vmem:[#allocation2 + $0xc4] sm:$0xf] }
  0x20   :  { %v2133_v59 = vld [vmem:[#allocation2 + $0x40] sm:$0xf]  ;;  %v3074_v60 = vld [vmem:[#allocation2 + $0x4c] sm:$0xf0]  ;;  %v2534_v62 = vor.u32 %v3174_v55, %v2533_v54  ;;  %1286 = vmatpush.bf16.msra.mxu1 %v2278_v57  ;;  %v2199_v54 = vld [vmem:[#allocation2 + $0xd0] sm:$0xf0]  ;;  %v3440_v57 = vpack.c.bf16 %v68_v45, %v68_v45 }
  0x21   :  { %v2261_v61 = vld [vmem:[#allocation2 + $0x140] sm:$0xf]  ;;  %v3106_v63 = vld [vmem:[#allocation2 + $0x14c] sm:$0xf0]  ;;  %v2134_v4 = vor.u32 %v3074_v60, %v2133_v59  ;;  %1299 = vmatpush.bf16.msra.mxu2 %v2406_v58  ;;  %v66_v58 = vld [vmem:[%s3563_s0 + $0x8] sm:$0xff]  ;;  %v2346_v59 = vor.u32 %v3124_v43, %v2343_v44 }
  0x22   :  { %v2389_v0 = vld [vmem:[#allocation2 + $0x240] sm:$0xf]  ;;  %v3138_v1 = vld [vmem:[#allocation2 + $0x24c] sm:$0xf0]  ;;  %v2262_v5 = vor.u32 %v3106_v63, %v2261_v61  ;;  %1312 = vmatpush.bf16.msra.mxu3 %v2534_v62  ;;  %v3120_v61 = vld [vmem:[#allocation2 + $0x1c4] sm:$0xf] }
  0x23   :  { %v2517_v2 = vld [vmem:[#allocation2 + $0x340] sm:$0xf]  ;;  %v3170_v3 = vld [vmem:[#allocation2 + $0x34c] sm:$0xf0]  ;;  %v2390_v6 = vor.u32 %v3138_v1, %v2389_v0  ;;  %1274 = vmatpush.bf16.msra.mxu0 %v2134_v4  ;;  %v2327_v62 = vld [vmem:[#allocation2 + $0x1d0] sm:$0xf0]  ;;  %v2202_v0 = vor.u32 %v3088_v53, %v2199_v54 }
  0x24   :  { %v2117_v7 = vld [vmem:[#allocation2 + $0x20] sm:$0xf]  ;;  %v3070_v8 = vld [vmem:[#allocation2 + $0x2c] sm:$0xf0]  ;;  %v2518_v10 = vor.u32 %v3170_v3, %v2517_v2  ;;  %1287 = vmatpush.bf16.msra.mxu1 %v2262_v5  ;;  %v3084_v5 = vld [vmem:[#allocation2 + $0xa4] sm:$0xf] }
  0x25   :  { %v2245_v9 = vld [vmem:[#allocation2 + $0x120] sm:$0xf]  ;;  %v3102_v11 = vld [vmem:[#allocation2 + $0x12c] sm:$0xf0]  ;;  %v2118_v16 = vor.u32 %v3070_v8, %v2117_v7  ;;  %1300 = vmatpush.bf16.msra.mxu2 %v2390_v6  ;;  %v2183_v6 = vld [vmem:[#allocation2 + $0xb0] sm:$0xf0]  ;;  %v3447_v7 = vpack.c.bf16 %v66_v58, %v66_v58  ;;  %v2330_v8 = vor.u32 %v3120_v61, %v2327_v62 }
  0x26   :  { %v2373_v12 = vld [vmem:[#allocation2 + $0x220] sm:$0xf]  ;;  %v3134_v13 = vld [vmem:[#allocation2 + $0x22c] sm:$0xf0]  ;;  %v2246_v20 = vor.u32 %v3102_v11, %v2245_v9  ;;  %1313 = vmatpush.bf16.msra.mxu3 %v2518_v10  ;;  %v3116_v10 = vld [vmem:[#allocation2 + $0x1a4] sm:$0xf] }
  0x27   :  { %v2501_v14 = vld [vmem:[#allocation2 + $0x320] sm:$0xf]  ;;  %v3166_v15 = vld [vmem:[#allocation2 + $0x32c] sm:$0xf0]  ;;  %v2374_v21 = vor.u32 %v3134_v13, %v2373_v12  ;;  %1275 = vmatpush.bf16.msra.mxu0 %v2118_v16  ;;  %v2311_v11 = vld [vmem:[#allocation2 + $0x1b0] sm:$0xf0]  ;;  %v2186_v13 = vor.u32 %v3084_v5, %v2183_v6 }
  0x28   :  { %v2101_v17 = vld [vmem:[#allocation2] sm:$0xf]  ;;  %v3066_v18 = vld [vmem:[#allocation2 + $0xc] sm:$0xf0]  ;;  %v2502_v25 = vor.u32 %v3166_v15, %v2501_v14  ;;  %1288 = vmatpush.bf16.msra.mxu1 %v2246_v20  ;;  %v2314_v20 = vor.u32 %v3116_v10, %v2311_v11  ;;  %v3072_v43 = vld [vmem:[#allocation2 + $0x44] sm:$0xf] }
  0x29   :  { %v2229_v19 = vld [vmem:[#allocation2 + $0x100] sm:$0xf]  ;;  %v3098_v22 = vld [vmem:[#allocation2 + $0x10c] sm:$0xf0]  ;;  %v2102_v32 = vor.u32 %v3066_v18, %v2101_v17  ;;  %1301 = vmatpush.bf16.msra.mxu2 %v2374_v21  ;;  %v3080_v18 = vld [vmem:[#allocation2 + $0x84] sm:$0xf] }
  0x2a   :  { %v2357_v23 = vld [vmem:[#allocation2 + $0x200] sm:$0xf]  ;;  %v3130_v24 = vld [vmem:[#allocation2 + $0x20c] sm:$0xf0]  ;;  %v2230_v36 = vor.u32 %v3098_v22, %v2229_v19  ;;  %1314 = vmatpush.bf16.msra.mxu3 %v2502_v25  ;;  %v2167_v19 = vld [vmem:[#allocation2 + $0x90] sm:$0xf0] }
  0x2b   :  { %v2485_v26 = vld [vmem:[#allocation2 + $0x300] sm:$0xf]  ;;  %v3162_v27 = vld [vmem:[#allocation2 + $0x30c] sm:$0xf0]  ;;  %v2358_v37 = vor.u32 %v3130_v24, %v2357_v23  ;;  %1276 = vmatpush.bf16.msra.mxu0 %v2102_v32  ;;  %v3112_v22 = vld [vmem:[#allocation2 + $0x184] sm:$0xf]  ;;  %v2170_v25 = vor.u32 %v3080_v18, %v2167_v19 }
  0x2c   :  { %v2725_v28 = vld [vmem:[#allocation2 + $0x4e0] sm:$0xf]  ;;  %v3222_v29 = vld [vmem:[#allocation2 + $0x4ec] sm:$0xf0]  ;;  %v2486_v41 = vor.u32 %v3162_v27, %v2485_v26  ;;  %1289 = vmatpush.bf16.msra.mxu1 %v2230_v36  ;;  %v2295_v23 = vld [vmem:[#allocation2 + $0x190] sm:$0xf0] }
  0x2d   :  { %v2853_v30 = vld [vmem:[#allocation2 + $0x5e0] sm:$0xf]  ;;  %v3254_v31 = vld [vmem:[#allocation2 + $0x5ec] sm:$0xf0]  ;;  %v2726_v42 = vor.u32 %v3222_v29, %v2725_v28  ;;  %1302 = vmatpush.bf16.msra.mxu2 %v2358_v37  ;;  %v2298_v33 = vor.u32 %v3112_v22, %v2295_v23  ;;  %v2279_v36 = vld [vmem:[#allocation2 + $0x170] sm:$0xf0] }
  0x2e   :  { %v67_v35 = vld [vmem:[%s3563_s0 + $0x10] sm:$0xff]  ;;  %v2869_v38 = vld [vmem:[#allocation2 + $0x600] sm:$0xf]  ;;  %v2854_v46 = vor.u32 %v3254_v31, %v2853_v30  ;;  %1315 = vmatpush.bf16.msra.mxu3 %v2486_v41  ;;  %v3076_v30 = vld [vmem:[#allocation2 + $0x64] sm:$0xf] }
  0x2f   :  { %v3258_v39 = vld [vmem:[#allocation2 + $0x60c] sm:$0xf0]  ;;  %v65_v40 = vld [vmem:[%s3563_s0] sm:$0xff]  ;;  %v3436_v51 = vpack.c.bf16 %v67_v35, %v67_v35  ;;  %1321 = vmatpush.bf16.msrb.mxu0 %v2726_v42  ;;  %1290 = vmatmul.bf16.vlgmr.msra.gmra.mxu1 %v3447_v7  ;;  %v2151_v31 = vld [vmem:[#allocation2 + $0x70] sm:$0xf0] }
  0x30   :  { %v2709_v48 = vld [vmem:[#allocation2 + $0x4c0] sm:$0xf]  ;;  %v3218_v49 = vld [vmem:[#allocation2 + $0x4cc] sm:$0xf0]  ;;  %v3438_v55 = vpack.c.bf16 %v65_v40, %v65_v40  ;;  %v2870_v56 = vor.u32 %v3258_v39, %v2869_v38  ;;  %1334 = vmatpush.bf16.msrb.mxu1 %v2854_v46  ;;  %v3108_v35 = vld [vmem:[#allocation2 + $0x164] sm:$0xf]  ;;  %v2154_v38 = vor.u32 %v3076_v30, %v2151_v31 }
  0x31   :  { %v2837_v50 = vld [vmem:[#allocation2 + $0x5c0] sm:$0xf]  ;;  %v3250_v52 = vld [vmem:[#allocation2 + $0x5cc] sm:$0xf0]  ;;  %v2710_v60 = vor.u32 %v3218_v49, %v2709_v48  ;;  %1303 = vmatmul.bf16.vlgmr.msra.gmra.mxu2 %v3436_v51  ;;  %1316 = vmatmul.bf16.vlgmr.msra.gmra.mxu3 %v3440_v57  ;;  %v2135_v44 = vld [vmem:[#allocation2 + $0x50] sm:$0xf0]  ;;  %v2282_v46 = vor.u32 %v3108_v35, %v2279_v36 }
  0x32   :  { %1360 = vmatpush.bf16.msrb.mxu3 %v2218_v47  ;;  %v2838_v63 = vor.u32 %v3250_v52, %v2837_v50  ;;  %v2693_v1 = vld [vmem:[#allocation2 + $0x4a0] sm:$0xf]  ;;  %v3214_v2 = vld [vmem:[#allocation2 + $0x4ac] sm:$0xf0]  ;;  %1277 = vmatmul.bf16.vlgmr.msra.gmra.mxu0 %v3438_v55  ;;  %v3104_v48 = vld [vmem:[#allocation2 + $0x144] sm:$0xf]  ;;  %v2138_v52 = vor.u32 %v3072_v43, %v2135_v44 }
  0x33   :  { %v2821_v3 = vld [vmem:[#allocation2 + $0x5a0] sm:$0xf]  ;;  %v3246_v4 = vld [vmem:[#allocation2 + $0x5ac] sm:$0xf0]  ;;  %1354 = vmatpush.bf16.msrb.mxu2 %v2870_v56  ;;  %1322 = vmatpush.bf16.msrb.mxu0 %v2710_v60  ;;  %v2694_v9 = vor.u32 %v3214_v2, %v2693_v1  ;;  %v2263_v49 = vld [vmem:[#allocation2 + $0x150] sm:$0xf0] }
  0x34   :  { %1335 = vmatpush.bf16.msrb.mxu1 %v2838_v63  ;;  %v2822_v12 = vor.u32 %v3246_v4, %v2821_v3  ;;  %v2677_v14 = vld [vmem:[#allocation2 + $0x480] sm:$0xf]  ;;  %v3210_v15 = vld [vmem:[#allocation2 + $0x48c] sm:$0xf0]  ;;  %v2119_v60 = vld [vmem:[#allocation2 + $0x30] sm:$0xf0]  ;;  %v2266_v61 = vor.u32 %v3104_v48, %v2263_v49 }
  0x35   :  { %v2805_v16 = vld [vmem:[#allocation2 + $0x580] sm:$0xf]  ;;  %v3242_v17 = vld [vmem:[#allocation2 + $0x58c] sm:$0xf0]  ;;  %v2678_v21 = vor.u32 %v3210_v15, %v2677_v14  ;;  %v3100_v63 = vld [vmem:[#allocation2 + $0x124] sm:$0xf] }
  0x36   :  { %1361 = vmatpush.bf16.msrb.mxu3 %v2202_v0  ;;  %v2806_v24 = vor.u32 %v3242_v17, %v2805_v16  ;;  %v2661_v26 = vld [vmem:[#allocation2 + $0x460] sm:$0xf]  ;;  %v3206_v27 = vld [vmem:[#allocation2 + $0x46c] sm:$0xf0]  ;;  %v2247_v0 = vld [vmem:[#allocation2 + $0x130] sm:$0xf0] }
  0x37   :  { %1373 = vmatpush.bf16.msra.mxu2 %v2346_v59  ;;  %1323 = vmatpush.bf16.msrb.mxu0 %v2694_v9  ;;  %v2789_v28 = vld [vmem:[#allocation2 + $0x560] sm:$0xf]  ;;  %v3238_v29 = vld [vmem:[#allocation2 + $0x56c] sm:$0xf0]  ;;  %v2662_v34 = vor.u32 %v3206_v27, %v2661_v26  ;;  %v3068_v59 = vld [vmem:[#allocation2 + $0x24] sm:$0xf]  ;;  %v2250_v14 = vor.u32 %v3100_v63, %v2247_v0 }
  0x38   :  { %1336 = vmatpush.bf16.msrb.mxu1 %v2822_v12  ;;  %v71_v32 = vld [vmem:[%s3563_s0 + $0x30] sm:$0xff]  ;;  %v2790_v37 = vor.u32 %v3238_v29, %v2789_v28  ;;  %v2645_v39 = vld [vmem:[#allocation2 + $0x440] sm:$0xf]  ;;  %v2122_v3 = vor.u32 %v3068_v59, %v2119_v60  ;;  %v3156_v10 = vld [vmem:[#allocation2 + $0x2e4] sm:$0xf] }
  0x39   :  { %v3202_v40 = vld [vmem:[#allocation2 + $0x44c] sm:$0xf0]  ;;  %v2773_v41 = vld [vmem:[#allocation2 + $0x540] sm:$0xf]  ;;  %v3454_v45 = vpack.c.bf16 %v71_v32, %v71_v32  ;;  %v2103_v9 = vld [vmem:[#allocation2 + $0x10] sm:$0xf0] }
  0x3a   :  { %1362 = vmatpush.bf16.msrb.mxu3 %v2186_v13  ;;  %v3234_v42 = vld [vmem:[#allocation2 + $0x54c] sm:$0xf0]  ;;  %v2646_v47 = vor.u32 %v3202_v40, %v2645_v39  ;;  %v2629_v53 = vld [vmem:[#allocation2 + $0x420] sm:$0xf]  ;;  %v2471_v11 = vld [vmem:[#allocation2 + $0x2f0] sm:$0xf0] }
  0x3b   :  { %1374 = vmatpush.bf16.msra.mxu2 %v2330_v8  ;;  %1324 = vmatpush.bf16.msrb.mxu0 %v2678_v21  ;;  %v2774_v50 = vor.u32 %v3234_v42, %v2773_v41  ;;  %v3198_v54 = vld [vmem:[#allocation2 + $0x42c] sm:$0xf0]  ;;  %v2757_v56 = vld [vmem:[#allocation2 + $0x520] sm:$0xf]  ;;  %v3064_v8 = vld [vmem:[#allocation2 + $0x4] sm:$0xf] }
  0x3c   :  { %1337 = vmatpush.bf16.msrb.mxu1 %v2806_v24  ;;  %v3230_v58 = vld [vmem:[#allocation2 + $0x52c] sm:$0xf0]  ;;  %v2630_v62 = vor.u32 %v3198_v54, %v2629_v53  ;;  %v2613_v1 = vld [vmem:[#allocation2 + $0x400] sm:$0xf]  ;;  %v3188_v12 = vld [vmem:[#allocation2 + $0x3e4] sm:$0xf]  ;;  %v2474_v24 = vor.u32 %v3156_v10, %v2471_v11 }
  0x3d   :  { %v2758_v2 = vor.u32 %v3230_v58, %v2757_v56  ;;  %v3194_v4 = vld [vmem:[#allocation2 + $0x40c] sm:$0xf0]  ;;  %v2741_v5 = vld [vmem:[#allocation2 + $0x500] sm:$0xf]  ;;  %v2599_v13 = vld [vmem:[#allocation2 + $0x3f0] sm:$0xf0] }
  0x3e   :  { %1363 = vmatpush.bf16.msrb.mxu3 %v2170_v25  ;;  %v3226_v6 = vld [vmem:[#allocation2 + $0x50c] sm:$0xf0]  ;;  %v2614_v15 = vor.u32 %v3194_v4, %v2613_v1  ;;  %v3220_v16 = vld [vmem:[#allocation2 + $0x4e4] sm:$0xf]  ;;  %v2727_v17 = vld [vmem:[#allocation2 + $0x4f0] sm:$0xf0]  ;;  %v2602_v25 = vor.u32 %v3188_v12, %v2599_v13 }
  0x3f   :  { %1375 = vmatpush.bf16.msra.mxu2 %v2314_v20  ;;  %1325 = vmatpush.bf16.msrb.mxu0 %v2662_v34  ;;  %v69_v18 = vld [vmem:[%s3563_s0 + $0x20] sm:$0xff]  ;;  %v2742_v19 = vor.u32 %v3226_v6, %v2741_v5  ;;  %v2106_v20 = vor.u32 %v3064_v8, %v2103_v9  ;;  %v2231_v22 = vld [vmem:[#allocation2 + $0x110] sm:$0xf0]  ;;  %v70_v23 = vld [vmem:[%s3563_s0 + $0x28] sm:$0xff]  ;;  %v2730_v29 = vor.u32 %v3220_v16, %v2727_v17 }
  0x40   :  { %1338 = vmatpush.bf16.msrb.mxu1 %v2790_v37  ;;  %v3096_v21 = vld [vmem:[#allocation2 + $0x104] sm:$0xf]  ;;  %v2855_v27 = vld [vmem:[#allocation2 + $0x5f0] sm:$0xf0]  ;;  %v3464_v30 = vpack.c.bf16 %v69_v18, %v69_v18  ;;  %v3466_v35 = vpack.c.bf16 %v70_v23, %v70_v23 }
  0x41   :  { %2883 = vmatmul.msk.bf16.vlgmr.msrb.gmra.mxu2 %vm1265_vm0, %v3454_v45  ;;  %v3252_v26 = vld [vmem:[#allocation2 + $0x5e4] sm:$0xf]  ;;  %v2455_v31 = vld [vmem:[#allocation2 + $0x2d0] sm:$0xf0]  ;;  %v2234_v34 = vor.u32 %v3096_v21, %v2231_v22 }
  0x42   :  { %1364 = vmatpush.bf16.msrb.mxu3 %v2154_v38  ;;  %v3152_v28 = vld [vmem:[#allocation2 + $0x2c4] sm:$0xf]  ;;  %v2711_v37 = vld [vmem:[#allocation2 + $0x4d0] sm:$0xf0]  ;;  %v2858_v38 = vor.u32 %v3252_v26, %v2855_v27 }
  0x43   :  { %1376 = vmatpush.bf16.msra.mxu2 %v2298_v33  ;;  %1326 = vmatpush.bf16.msrb.mxu0 %v2646_v47  ;;  %v3184_v32 = vld [vmem:[#allocation2 + $0x3c4] sm:$0xf]  ;;  %v2583_v33 = vld [vmem:[#allocation2 + $0x3d0] sm:$0xf0]  ;;  %v2458_v39 = vor.u32 %v3152_v28, %v2455_v31 }
  0x44   :  { %1339 = vmatpush.bf16.msrb.mxu1 %v2774_v50  ;;  %v3216_v36 = vld [vmem:[#allocation2 + $0x4c4] sm:$0xf]  ;;  %v2586_v40 = vor.u32 %v3184_v32, %v2583_v33  ;;  %v2839_v42 = vld [vmem:[#allocation2 + $0x5d0] sm:$0xf0] }
  0x45   :  { %v3248_v41 = vld [vmem:[#allocation2 + $0x5c4] sm:$0xf]  ;;  %v2714_v44 = vor.u32 %v3216_v36, %v2711_v37  ;;  %v2567_v48 = vld [vmem:[#allocation2 + $0x3b0] sm:$0xf0] }
  0x46   :  { %1365 = vmatpush.bf16.msrb.mxu3 %v2138_v52  ;;  %v3148_v43 = vld [vmem:[#allocation2 + $0x2a4] sm:$0xf]  ;;  %v2695_v50 = vld [vmem:[#allocation2 + $0x4b0] sm:$0xf0]  ;;  %v2842_v52 = vor.u32 %v3248_v41, %v2839_v42 }
  0x47   :  { %1377 = vmatpush.bf16.msra.mxu2 %v2282_v46  ;;  %1327 = vmatpush.bf16.msrb.mxu0 %v2630_v62  ;;  %v2439_v46 = vld [vmem:[#allocation2 + $0x2b0] sm:$0xf0]  ;;  %v3180_v47 = vld [vmem:[#allocation2 + $0x3a4] sm:$0xf] }
  0x48   :  { %1340 = vmatpush.bf16.msrb.mxu1 %v2758_v2  ;;  %v3212_v49 = vld [vmem:[#allocation2 + $0x4a4] sm:$0xf]  ;;  %v2442_v53 = vor.u32 %v3148_v43, %v2439_v46  ;;  %v2570_v54 = vor.u32 %v3180_v47, %v2567_v48  ;;  %v2823_v58 = vld [vmem:[#allocation2 + $0x5b0] sm:$0xf0] }
  0x49   :  { %v3244_v56 = vld [vmem:[#allocation2 + $0x5a4] sm:$0xf]  ;;  %v2698_v60 = vor.u32 %v3212_v49, %v2695_v50  ;;  %v2551_v63 = vld [vmem:[#allocation2 + $0x390] sm:$0xf0] }
  0x4a   :  { %1366 = vmatpush.bf16.msrb.mxu3 %v2122_v3  ;;  %v3144_v59 = vld [vmem:[#allocation2 + $0x284] sm:$0xf]  ;;  %v2679_v1 = vld [vmem:[#allocation2 + $0x490] sm:$0xf0]  ;;  %v2826_v2 = vor.u32 %v3244_v56, %v2823_v58  ;;  %v2221_v56 = vld [vmem:[#allocation2 + $0xe8] sm:$0xf] }
  0x4b   :  { %1378 = vmatpush.bf16.msra.mxu2 %v2266_v61  ;;  %1328 = vmatpush.bf16.msrb.mxu0 %v2614_v15  ;;  %v2423_v61 = vld [vmem:[#allocation2 + $0x290] sm:$0xf0]  ;;  %v3176_v62 = vld [vmem:[#allocation2 + $0x384] sm:$0xf]  ;;  %v3095_v58 = vld [vmem:[#allocation2 + $0xf4] sm:$0xf0] }
  0x4c   :  { %1341 = vmatpush.bf16.msrb.mxu1 %v2742_v19  ;;  %v3208_v0 = vld [vmem:[#allocation2 + $0x484] sm:$0xf]  ;;  %v2426_v3 = vor.u32 %v3144_v59, %v2423_v61  ;;  %v2554_v4 = vor.u32 %v3176_v62, %v2551_v63  ;;  %v2807_v6 = vld [vmem:[#allocation2 + $0x590] sm:$0xf0]  ;;  %v2349_v59 = vld [vmem:[#allocation2 + $0x1e8] sm:$0xf] }
  0x4d   :  { %v3240_v5 = vld [vmem:[#allocation2 + $0x584] sm:$0xf]  ;;  %v2682_v9 = vor.u32 %v3208_v0, %v2679_v1  ;;  %v2407_v10 = vld [vmem:[#allocation2 + $0x270] sm:$0xf0]  ;;  %v3127_v61 = vld [vmem:[#allocation2 + $0x1f4] sm:$0xf0] }
  0x4e   :  { %1367 = vmatpush.bf16.msrb.mxu3 %v2106_v20  ;;  %1329 = vmatmul.bf16.vlgmr.msrb.gmra.mxu0 %v3464_v30  ;;  %v3140_v8 = vld [vmem:[#allocation2 + $0x264] sm:$0xf]  ;;  %v2535_v12 = vld [vmem:[#allocation2 + $0x370] sm:$0xf0]  ;;  %v2810_v15 = vor.u32 %v3240_v5, %v2807_v6  ;;  %v2222_v6 = vor.u32 %v3095_v58, %v2221_v56  ;;  %v3079_v56 = vld [vmem:[#allocation2 + $0x74] sm:$0xf0] }
  0x4f   :  { %1379 = vmatpush.bf16.msra.mxu2 %v2250_v14  ;;  %1386 = vmatpush.bf16.msra.mxu0 %v2474_v24  ;;  %v3172_v11 = vld [vmem:[#allocation2 + $0x364] sm:$0xf]  ;;  %v2663_v14 = vld [vmem:[#allocation2 + $0x470] sm:$0xf0]  ;;  %v2410_v16 = vor.u32 %v3140_v8, %v2407_v10  ;;  %v3159_v8 = vld [vmem:[#allocation2 + $0x2f4] sm:$0xf0] }
  0x50   :  { %1399 = vmatpush.bf16.msra.mxu1 %v2602_v25  ;;  %v3204_v13 = vld [vmem:[#allocation2 + $0x464] sm:$0xf]  ;;  %v2538_v17 = vor.u32 %v3172_v11, %v2535_v12  ;;  %v2791_v19 = vld [vmem:[#allocation2 + $0x570] sm:$0xf0]  ;;  %v3191_v10 = vld [vmem:[#allocation2 + $0x3f4] sm:$0xf0]  ;;  %v2350_v11 = vor.u32 %v3127_v61, %v2349_v59 }
  0x51   :  { %1342 = vmatmul.bf16.vlgmr.msrb.gmra.mxu1 %v3466_v35  ;;  %1368 = vmatmul.bf16.vlgmr.msrb.gmra.mxu3 %v3438_v55  ;;  %v3236_v18 = vld [vmem:[#allocation2 + $0x564] sm:$0xf]  ;;  %v2666_v21 = vor.u32 %v3204_v13, %v2663_v14  ;;  %v2391_v22 = vld [vmem:[#allocation2 + $0x250] sm:$0xf0]  ;;  %v2205_v13 = vld [vmem:[#allocation2 + $0xc8] sm:$0xf] }
  0x52   :  { %1412 = vmatpush.bf16.msra.mxu3 %v2730_v29  ;;  %v3136_v20 = vld [vmem:[#allocation2 + $0x244] sm:$0xf]  ;;  %v2519_v24 = vld [vmem:[#allocation2 + $0x350] sm:$0xf0]  ;;  %v2794_v27 = vor.u32 %v3236_v18, %v2791_v19  ;;  %v3091_v14 = vld [vmem:[#allocation2 + $0xd4] sm:$0xf0] }
  0x53   :  { %1380 = vmatpush.bf16.msra.mxu2 %v2234_v34  ;;  %1387 = vmatpush.bf16.msra.mxu0 %v2458_v39  ;;  %v3168_v23 = vld [vmem:[#allocation2 + $0x344] sm:$0xf]  ;;  %v2647_v26 = vld [vmem:[#allocation2 + $0x450] sm:$0xf0]  ;;  %v2394_v28 = vor.u32 %v3136_v20, %v2391_v22  ;;  %v2461_v20 = vld [vmem:[#allocation2 + $0x2c8] sm:$0xf] }
  0x54   :  { %1400 = vmatpush.bf16.msra.mxu1 %v2586_v40  ;;  %v3200_v25 = vld [vmem:[#allocation2 + $0x444] sm:$0xf]  ;;  %v2522_v29 = vor.u32 %v3168_v23, %v2519_v24  ;;  %v2775_v32 = vld [vmem:[#allocation2 + $0x550] sm:$0xf0]  ;;  %v3155_v22 = vld [vmem:[#allocation2 + $0x2d4] sm:$0xf0] }
  0x55   :  { %v3232_v31 = vld [vmem:[#allocation2 + $0x544] sm:$0xf]  ;;  %v2650_v34 = vor.u32 %v3200_v25, %v2647_v26  ;;  %v2375_v36 = vld [vmem:[#allocation2 + $0x230] sm:$0xf0]  ;;  %v2589_v23 = vld [vmem:[#allocation2 + $0x3c8] sm:$0xf] }
  0x56   :  { %1413 = vmatpush.bf16.msra.mxu3 %v2714_v44  ;;  %1381 = vmatmul.bf16.vlgmr.msra.gmra.mxu2 %v3447_v7  ;;  %v3132_v33 = vld [vmem:[#allocation2 + $0x224] sm:$0xf]  ;;  %v2631_v40 = vld [vmem:[#allocation2 + $0x430] sm:$0xf0]  ;;  %v2778_v41 = vor.u32 %v3232_v31, %v2775_v32  ;;  %v3187_v24 = vld [vmem:[#allocation2 + $0x3d4] sm:$0xf0]  ;;  %v2462_v31 = vor.u32 %v3155_v22, %v2461_v20 }
  0x57   :  { %1425 = vmatpush.bf16.msrb.mxu2 %v2858_v38  ;;  %1388 = vmatpush.bf16.msra.mxu0 %v2442_v53  ;;  %v3164_v37 = vld [vmem:[#allocation2 + $0x324] sm:$0xf]  ;;  %v2503_v38 = vld [vmem:[#allocation2 + $0x330] sm:$0xf0]  ;;  %v2378_v44 = vor.u32 %v3132_v33, %v2375_v36  ;;  %v2189_v26 = vld [vmem:[#allocation2 + $0xa8] sm:$0xf]  ;;  %v2590_v32 = vor.u32 %v3187_v24, %v2589_v23 }
  0x58   :  { %1401 = vmatpush.bf16.msra.mxu1 %v2570_v54  ;;  %v3196_v39 = vld [vmem:[#allocation2 + $0x424] sm:$0xf]  ;;  %v2759_v43 = vld [vmem:[#allocation2 + $0x530] sm:$0xf0]  ;;  %v2506_v46 = vor.u32 %v3164_v37, %v2503_v38  ;;  %v2445_v33 = vld [vmem:[#allocation2 + $0x2a8] sm:$0xf] }
  0x59   :  { %v3228_v42 = vld [vmem:[#allocation2 + $0x524] sm:$0xf]  ;;  %v2359_v48 = vld [vmem:[#allocation2 + $0x210] sm:$0xf0]  ;;  %v2634_v50 = vor.u32 %v3196_v39, %v2631_v40  ;;  %v2573_v37 = vld [vmem:[#allocation2 + $0x3a8] sm:$0xf] }
  0x5a   :  { %1414 = vmatpush.bf16.msra.mxu3 %v2698_v60  ;;  %v3128_v47 = vld [vmem:[#allocation2 + $0x204] sm:$0xf]  ;;  %v2615_v54 = vld [vmem:[#allocation2 + $0x410] sm:$0xf0]  ;;  %v2762_v60 = vor.u32 %v3228_v42, %v2759_v43  ;;  %v3183_v38 = vld [vmem:[#allocation2 + $0x3b4] sm:$0xf0] }
  0x5b   :  { %1426 = vmatpush.bf16.msrb.mxu2 %v2842_v52  ;;  %1389 = vmatpush.bf16.msra.mxu0 %v2426_v3  ;;  %v3160_v49 = vld [vmem:[#allocation2 + $0x304] sm:$0xf]  ;;  %v2487_v52 = vld [vmem:[#allocation2 + $0x310] sm:$0xf0]  ;;  %v2362_v0 = vor.u32 %v3128_v47, %v2359_v48  ;;  %v2173_v40 = vld [vmem:[#allocation2 + $0x88] sm:$0xf] }
  0x5c   :  { %1402 = vmatpush.bf16.msra.mxu1 %v2554_v4  ;;  %v3192_v53 = vld [vmem:[#allocation2 + $0x404] sm:$0xf]  ;;  %v2871_v63 = vld [vmem:[#allocation2 + $0x610] sm:$0xf0]  ;;  %v2490_v1 = vor.u32 %v3160_v49, %v2487_v52  ;;  %v2477_v4 = vld [vmem:[#allocation2 + $0x2e8] sm:$0xf] }
  0x5d   :  { %v3256_v62 = vld [vmem:[#allocation2 + $0x604] sm:$0xf]  ;;  %v2743_v3 = vld [vmem:[#allocation2 + $0x510] sm:$0xf0]  ;;  %v2618_v5 = vor.u32 %v3192_v53, %v2615_v54  ;;  %v2478_v18 = vor.u32 %v3159_v8, %v2477_v4  ;;  %v2301_v42 = vld [vmem:[#allocation2 + $0x188] sm:$0xf] }
  0x5e   :  { %1415 = vmatpush.bf16.msra.mxu3 %v2682_v9  ;;  %v2605_v9 = vld [vmem:[#allocation2 + $0x3e8] sm:$0xf]  ;;  %v2874_v12 = vor.u32 %v3256_v62, %v2871_v63  ;;  %v3115_v43 = vld [vmem:[#allocation2 + $0x194] sm:$0xf0] }
  0x5f   :  { %1427 = vmatpush.bf16.msrb.mxu2 %v2826_v2  ;;  %1390 = vmatpush.bf16.msra.mxu0 %v2410_v16  ;;  %v3224_v2 = vld [vmem:[#allocation2 + $0x504] sm:$0xf]  ;;  %v2333_v16 = vld [vmem:[#allocation2 + $0x1c8] sm:$0xf]  ;;  %v2606_v19 = vor.u32 %v3191_v10, %v2605_v9  ;;  %v3147_v49 = vld [vmem:[#allocation2 + $0x294] sm:$0xf0]  ;;  %v2302_v53 = vor.u32 %v3115_v43, %v2301_v42 }
  0x60   :  { %1403 = vmatpush.bf16.msra.mxu1 %v2538_v17  ;;  %v3123_v17 = vld [vmem:[#allocation2 + $0x1d4] sm:$0xf0]  ;;  %v2429_v47 = vld [vmem:[#allocation2 + $0x288] sm:$0xf] }
  0x61   :  { %v2334_v25 = vor.u32 %v3123_v17, %v2333_v16  ;;  %v3179_v52 = vld [vmem:[#allocation2 + $0x394] sm:$0xf0]  ;;  %v2157_v54 = vld [vmem:[#allocation2 + $0x68] sm:$0xf] }
  0x62   :  { %1416 = vmatpush.bf16.msra.mxu3 %v2666_v21  ;;  %v2206_v21 = vor.u32 %v3091_v14, %v2205_v13  ;;  %v2285_v58 = vld [vmem:[#allocation2 + $0x168] sm:$0xf]  ;;  %v3111_v59 = vld [vmem:[#allocation2 + $0x174] sm:$0xf0]  ;;  %v2158_v63 = vor.u32 %v3079_v56, %v2157_v54 }
  0x63   :  { %1428 = vmatpush.bf16.msrb.mxu2 %v2810_v15  ;;  %1391 = vmatpush.bf16.msra.mxu0 %v2394_v28  ;;  %v2746_v15 = vor.u32 %v3224_v2, %v2743_v3  ;;  %v2317_v28 = vld [vmem:[#allocation2 + $0x1a8] sm:$0xf]  ;;  %v3175_v2 = vld [vmem:[#allocation2 + $0x374] sm:$0xf0]  ;;  %v2286_v3 = vor.u32 %v3111_v59, %v2285_v58 }
  0x64   :  { %1404 = vmatpush.bf16.msra.mxu1 %v2522_v29  ;;  %v3119_v29 = vld [vmem:[#allocation2 + $0x1b4] sm:$0xf0]  ;;  %v2413_v62 = vld [vmem:[#allocation2 + $0x268] sm:$0xf] }
  0x65   :  { %v2318_v39 = vor.u32 %v3119_v29, %v2317_v28  ;;  %v2141_v4 = vld [vmem:[#allocation2 + $0x48] sm:$0xf]  ;;  %v3107_v8 = vld [vmem:[#allocation2 + $0x154] sm:$0xf0] }
  0x66   :  { %1417 = vmatpush.bf16.msra.mxu3 %v2650_v34  ;;  %v3151_v34 = vld [vmem:[#allocation2 + $0x2b4] sm:$0xf0]  ;;  %v2525_v14 = vld [vmem:[#allocation2 + $0x348] sm:$0xf] }
  0x67   :  { %1429 = vmatpush.bf16.msrb.mxu2 %v2794_v27  ;;  %1392 = vmatpush.bf16.msra.mxu0 %v2378_v44  ;;  %v3087_v27 = vld [vmem:[#allocation2 + $0xb4] sm:$0xf0]  ;;  %v2446_v44 = vor.u32 %v3151_v34, %v2445_v33  ;;  %v2125_v17 = vld [vmem:[#allocation2 + $0x28] sm:$0xf] }
  0x68   :  { %1405 = vmatpush.bf16.msra.mxu1 %v2506_v46  ;;  %v2190_v36 = vor.u32 %v3087_v27, %v2189_v26  ;;  %v2574_v46 = vor.u32 %v3183_v38, %v2573_v37  ;;  %v3139_v13 = vld [vmem:[#allocation2 + $0x254] sm:$0xf0]  ;;  %v2381_v23 = vld [vmem:[#allocation2 + $0x228] sm:$0xf] }
  0x69   :  { %v3103_v20 = vld [vmem:[#allocation2 + $0x134] sm:$0xf0]  ;;  %v2509_v26 = vld [vmem:[#allocation2 + $0x328] sm:$0xf] }
  0x6a   :  { %1418 = vmatpush.bf16.msra.mxu3 %v2634_v50  ;;  %v2557_v50 = vld [vmem:[#allocation2 + $0x388] sm:$0xf]  ;;  %v3135_v24 = vld [vmem:[#allocation2 + $0x234] sm:$0xf0] }
  0x6b   :  { %1430 = vmatpush.bf16.msrb.mxu2 %v2778_v41  ;;  %1393 = vmatpush.bf16.msra.mxu0 %v2362_v0  ;;  %v3083_v41 = vld [vmem:[#allocation2 + $0x94] sm:$0xf0]  ;;  %v2558_v61 = vor.u32 %v3179_v52, %v2557_v50  ;;  %v2109_v28 = vld [vmem:[#allocation2 + $0x8] sm:$0xf]  ;;  %v2382_v38 = vor.u32 %v3135_v24, %v2381_v23  ;;  %v2223_v50 = vld [vmem:[#allocation2 + $0xf8] sm:$0xf0] }
  0x6c   :  { %1406 = vmatpush.bf16.msra.mxu1 %v2490_v1  ;;  %v2174_v48 = vor.u32 %v3083_v41, %v2173_v40  ;;  %v3143_v0 = vld [vmem:[#allocation2 + $0x274] sm:$0xf0]  ;;  %v2541_v1 = vld [vmem:[#allocation2 + $0x368] sm:$0xf] }
  0x6d   :  { %v2414_v9 = vor.u32 %v3143_v0, %v2413_v62  ;;  %v2542_v10 = vor.u32 %v3175_v2, %v2541_v1  ;;  %v3167_v27 = vld [vmem:[#allocation2 + $0x334] sm:$0xf0]  ;;  %v2733_v34 = vld [vmem:[#allocation2 + $0x4e8] sm:$0xf]  ;;  %v3125_v1 = vld [vmem:[#allocation2 + $0x1ec] sm:$0xf] }
  0x6e   :  { %1419 = vmatpush.bf16.msra.mxu3 %v2618_v5  ;;  %1394 = vmatmul.bf16.vlgmr.msra.gmra.mxu0 %v3436_v51  ;;  %v3075_v5 = vld [vmem:[#allocation2 + $0x54] sm:$0xf0]  ;;  %v2861_v37 = vld [vmem:[#allocation2 + $0x5e8] sm:$0xf]  ;;  %v2351_v2 = vld [vmem:[#allocation2 + $0x1f8] sm:$0xf0] }
  0x6f   :  { %1431 = vmatpush.bf16.msrb.mxu2 %v2762_v60  ;;  %1445 = vmatpush.bf16.msrb.mxu0 %v2874_v12  ;;  %v2430_v60 = vor.u32 %v3147_v49, %v2429_v47  ;;  %v2142_v12 = vor.u32 %v3075_v5, %v2141_v4  ;;  %v3099_v33 = vld [vmem:[#allocation2 + $0x114] sm:$0xf0]  ;;  %v2365_v41 = vld [vmem:[#allocation2 + $0x208] sm:$0xf]  ;;  %v3093_v47 = vld [vmem:[#allocation2 + $0xec] sm:$0xf] }
  0x70   :  { %1451 = vmatpush.bf16.msrb.mxu1 %v2222_v6  ;;  %v2269_v6 = vld [vmem:[#allocation2 + $0x148] sm:$0xf]  ;;  %v3255_v40 = vld [vmem:[#allocation2 + $0x5f4] sm:$0xf0]  ;;  %v3089_v4 = vld [vmem:[#allocation2 + $0xcc] sm:$0xf] }
  0x71   :  { %1420 = vmatmul.bf16.vlgmr.msra.gmra.mxu3 %v3464_v30  ;;  %1407 = vmatmul.bf16.vlgmr.msra.gmra.mxu1 %v3440_v57  ;;  %v2270_v16 = vor.u32 %v3107_v8, %v2269_v6  ;;  %v3131_v42 = vld [vmem:[#allocation2 + $0x214] sm:$0xf0]  ;;  %v2877_v52 = vld [vmem:[#allocation2 + $0x608] sm:$0xf]  ;;  %v2862_v54 = vor.u32 %v3255_v40, %v2861_v37  ;;  %v2207_v5 = vld [vmem:[#allocation2 + $0xd8] sm:$0xf0] }
  0x72   :  { %1464 = vmatpush.bf16.msrb.mxu3 %v2350_v11  ;;  %v2397_v11 = vld [vmem:[#allocation2 + $0x248] sm:$0xf]  ;;  %v3219_v58 = vld [vmem:[#allocation2 + $0x4d4] sm:$0xf0]  ;;  %v2366_v59 = vor.u32 %v3131_v42, %v2365_v41  ;;  %v3113_v40 = vld [vmem:[#allocation2 + $0x18c] sm:$0xf] }
  0x73   :  { %1432 = vmatpush.bf16.msrb.mxu2 %v2746_v15  ;;  %1477 = vmatpush.bf16.msra.mxu0 %v2478_v18  ;;  %v3171_v15 = vld [vmem:[#allocation2 + $0x354] sm:$0xf0]  ;;  %v2717_v56 = vld [vmem:[#allocation2 + $0x4c8] sm:$0xf]  ;;  %v2303_v41 = vld [vmem:[#allocation2 + $0x198] sm:$0xf0] }
  0x74   :  { %1452 = vmatpush.bf16.msrb.mxu1 %v2206_v21  ;;  %v3071_v18 = vld [vmem:[#allocation2 + $0x34] sm:$0xf0]  ;;  %v2398_v21 = vor.u32 %v3139_v13, %v2397_v11  ;;  %v2526_v22 = vor.u32 %v3171_v15, %v2525_v14  ;;  %v2701_v8 = vld [vmem:[#allocation2 + $0x4a8] sm:$0xf]  ;;  %v2210_v13 = vor.u32 %v3089_v4, %v2207_v5  ;;  %v3121_v14 = vld [vmem:[#allocation2 + $0x1cc] sm:$0xf] }
  0x75   :  { %v3251_v62 = vld [vmem:[#allocation2 + $0x5d4] sm:$0xf0]  ;;  %v2829_v11 = vld [vmem:[#allocation2 + $0x5a8] sm:$0xf]  ;;  %v2335_v15 = vld [vmem:[#allocation2 + $0x1d8] sm:$0xf0] }
  0x76   :  { %1465 = vmatpush.bf16.msrb.mxu3 %v2334_v25  ;;  %1433 = vmatmul.bf16.vlgmr.msrb.gmra.mxu2 %v3466_v35  ;;  %v2126_v25 = vor.u32 %v3071_v18, %v2125_v17  ;;  %v3085_v17 = vld [vmem:[#allocation2 + $0xac] sm:$0xf]  ;;  %v2191_v18 = vld [vmem:[#allocation2 + $0xb8] sm:$0xf0]  ;;  %v2813_v23 = vld [vmem:[#allocation2 + $0x588] sm:$0xf] }
  0x77   :  { %1490 = vmatpush.bf16.msra.mxu2 %v2606_v19  ;;  %1478 = vmatpush.bf16.msra.mxu0 %v2462_v31  ;;  %v2253_v19 = vld [vmem:[#allocation2 + $0x128] sm:$0xf]  ;;  %v3067_v31 = vld [vmem:[#allocation2 + $0x14] sm:$0xf0]  ;;  %v3105_v4 = vld [vmem:[#allocation2 + $0x14c] sm:$0xf] }
  0x78   :  { %1453 = vmatpush.bf16.msrb.mxu1 %v2190_v36  ;;  %v2254_v29 = vor.u32 %v3103_v20, %v2253_v19  ;;  %v3223_v36 = vld [vmem:[#allocation2 + $0x4f4] sm:$0xf0]  ;;  %v2110_v43 = vor.u32 %v3067_v31, %v2109_v28  ;;  %v2685_v20 = vld [vmem:[#allocation2 + $0x488] sm:$0xf]  ;;  %v2175_v31 = vld [vmem:[#allocation2 + $0x98] sm:$0xf0] }
  0x79   :  { %v2734_v49 = vor.u32 %v3223_v36, %v2733_v34  ;;  %v3243_v24 = vld [vmem:[#allocation2 + $0x594] sm:$0xf0]  ;;  %v2797_v37 = vld [vmem:[#allocation2 + $0x568] sm:$0xf]  ;;  %v2271_v5 = vld [vmem:[#allocation2 + $0x158] sm:$0xf0] }
  0x7a   :  { %1466 = vmatpush.bf16.msrb.mxu3 %v2318_v39  ;;  %v2510_v39 = vor.u32 %v3167_v27, %v2509_v26  ;;  %v3117_v26 = vld [vmem:[#allocation2 + $0x1ac] sm:$0xf]  ;;  %v2319_v27 = vld [vmem:[#allocation2 + $0x1b8] sm:$0xf0]  ;;  %v3207_v34 = vld [vmem:[#allocation2 + $0x474] sm:$0xf0] }
  0x7b   :  { %1491 = vmatpush.bf16.msra.mxu2 %v2590_v32  ;;  %1479 = vmatpush.bf16.msra.mxu0 %v2446_v44  ;;  %v2237_v32 = vld [vmem:[#allocation2 + $0x108] sm:$0xf]  ;;  %v2322_v36 = vor.u32 %v3117_v26, %v2319_v27 }
  0x7c   :  { %1454 = vmatpush.bf16.msrb.mxu1 %v2174_v48  ;;  %v2493_v44 = vld [vmem:[#allocation2 + $0x308] sm:$0xf]  ;;  %v2238_v48 = vor.u32 %v3099_v33, %v2237_v32  ;;  %v2814_v32 = vor.u32 %v3243_v24, %v2813_v23  ;;  %v3065_v24 = vld [vmem:[#allocation2 + $0xc] sm:$0xf] }
  0x7d   :  { %v2669_v33 = vld [vmem:[#allocation2 + $0x468] sm:$0xf] }
  0x7e   :  { %1467 = vmatpush.bf16.msrb.mxu3 %v2302_v53  ;;  %2884 = vmatmul.msk.bf16.vlgmr.msrb.gmra.mxu0 %vm1265_vm0, %v3454_v45  ;;  %v3259_v53 = vld [vmem:[#allocation2 + $0x614] sm:$0xf0]  ;;  %v2670_v42 = vor.u32 %v3207_v34, %v2669_v33  ;;  %v3153_v33 = vld [vmem:[#allocation2 + $0x2cc] sm:$0xf]  ;;  %v2463_v34 = vld [vmem:[#allocation2 + $0x2d8] sm:$0xf0] }
  0x7f   :  { %1492 = vmatpush.bf16.msra.mxu2 %v2574_v46  ;;  %1480 = vmatpush.bf16.msra.mxu0 %v2430_v60  ;;  %v3163_v46 = vld [vmem:[#allocation2 + $0x314] sm:$0xf0]  ;;  %v2878_v0 = vor.u32 %v3259_v53, %v2877_v52 }
  0x80   :  { %1455 = vmatpush.bf16.msrb.mxu1 %v2158_v63  ;;  %v2494_v60 = vor.u32 %v3163_v46, %v2493_v44  ;;  %v2226_v63 = vor.u32 %v3093_v47, %v2223_v50  ;;  %v2159_v44 = vld [vmem:[#allocation2 + $0x78] sm:$0xf0]  ;;  %v2653_v47 = vld [vmem:[#allocation2 + $0x448] sm:$0xf]  ;;  %v3235_v52 = vld [vmem:[#allocation2 + $0x554] sm:$0xf0] }
  0x81   :  { %v2781_v50 = vld [vmem:[#allocation2 + $0x548] sm:$0xf] }
  0x82   :  { %1468 = vmatpush.bf16.msrb.mxu3 %v2286_v3  ;;  %v2718_v3 = vor.u32 %v3219_v58, %v2717_v56  ;;  %v2287_v56 = vld [vmem:[#allocation2 + $0x178] sm:$0xf0] }
  0x83   :  { %1493 = vmatpush.bf16.msra.mxu2 %v2558_v61  ;;  %1481 = vmatpush.bf16.msra.mxu0 %v2414_v9  ;;  %v2845_v61 = vld [vmem:[#allocation2 + $0x5c8] sm:$0xf]  ;;  %v3215_v9 = vld [vmem:[#allocation2 + $0x4b4] sm:$0xf0] }
  0x84   :  { %1456 = vmatpush.bf16.msrb.mxu1 %v2142_v12  ;;  %v2846_v6 = vor.u32 %v3251_v62, %v2845_v61  ;;  %v3247_v12 = vld [vmem:[#allocation2 + $0x5b4] sm:$0xf0]  ;;  %v2782_v61 = vor.u32 %v3235_v52, %v2781_v50  ;;  %v2637_v62 = vld [vmem:[#allocation2 + $0x428] sm:$0xf]  ;;  %v3149_v50 = vld [vmem:[#allocation2 + $0x2ac] sm:$0xf] }
  0x85   :  { %v2830_v19 = vor.u32 %v3247_v12, %v2829_v11  ;;  %v3195_v12 = vld [vmem:[#allocation2 + $0x414] sm:$0xf0]  ;;  %v2447_v52 = vld [vmem:[#allocation2 + $0x2b8] sm:$0xf0] }
  0x86   :  { %1469 = vmatpush.bf16.msrb.mxu3 %v2270_v16  ;;  %v2702_v16 = vor.u32 %v3215_v9, %v2701_v8  ;;  %v3069_v8 = vld [vmem:[#allocation2 + $0x2c] sm:$0xf]  ;;  %v2127_v9 = vld [vmem:[#allocation2 + $0x38] sm:$0xf0] }
  0x87   :  { %1494 = vmatpush.bf16.msra.mxu2 %v2542_v10  ;;  %1482 = vmatpush.bf16.msra.mxu0 %v2398_v21  ;;  %v2354_v10 = vor.u32 %v3125_v1, %v2351_v2  ;;  %v3211_v21 = vld [vmem:[#allocation2 + $0x494] sm:$0xf0]  ;;  %v2765_v1 = vld [vmem:[#allocation2 + $0x528] sm:$0xf] }
  0x88   :  { %1457 = vmatpush.bf16.msrb.mxu1 %v2126_v25  ;;  %v2194_v25 = vor.u32 %v3085_v17, %v2191_v18  ;;  %v2686_v28 = vor.u32 %v3211_v21, %v2685_v20  ;;  %v3231_v2 = vld [vmem:[#allocation2 + $0x534] sm:$0xf0]  ;;  %v2479_v17 = vld [vmem:[#allocation2 + $0x2f8] sm:$0xf0]  ;;  %v3189_v18 = vld [vmem:[#allocation2 + $0x3ec] sm:$0xf] }
  0x89   :  { %v2766_v11 = vor.u32 %v3231_v2, %v2765_v1  ;;  %v2607_v20 = vld [vmem:[#allocation2 + $0x3f8] sm:$0xf0]  ;;  %v3101_v21 = vld [vmem:[#allocation2 + $0x12c] sm:$0xf] }
  0x8a   :  { %1470 = vmatpush.bf16.msrb.mxu3 %v2254_v29  ;;  %v3081_v29 = vld [vmem:[#allocation2 + $0x8c] sm:$0xf]  ;;  %v2431_v2 = vld [vmem:[#allocation2 + $0x298] sm:$0xf0] }
  0x8b   :  { %1495 = vmatpush.bf16.msra.mxu2 %v2526_v22  ;;  %1483 = vmatpush.bf16.msra.mxu0 %v2382_v38  ;;  %v2338_v22 = vor.u32 %v3121_v14, %v2335_v15  ;;  %v3239_v38 = vld [vmem:[#allocation2 + $0x574] sm:$0xf0]  ;;  %v2274_v15 = vor.u32 %v3105_v4, %v2271_v5  ;;  %v3145_v1 = vld [vmem:[#allocation2 + $0x28c] sm:$0xf]  ;;  %v2559_v5 = vld [vmem:[#allocation2 + $0x398] sm:$0xf0] }
  0x8c   :  { %1458 = vmatpush.bf16.msrb.mxu1 %v2110_v43  ;;  %v3077_v43 = vld [vmem:[#allocation2 + $0x6c] sm:$0xf]  ;;  %v2798_v46 = vor.u32 %v3239_v38, %v2797_v37  ;;  %v3227_v14 = vld [vmem:[#allocation2 + $0x514] sm:$0xf0]  ;;  %v2591_v38 = vld [vmem:[#allocation2 + $0x3d8] sm:$0xf0] }
  0x8d   :  { %v2162_v53 = vor.u32 %v3077_v43, %v2159_v44  ;;  %v2863_v43 = vld [vmem:[#allocation2 + $0x5f8] sm:$0xf0]  ;;  %v2466_v44 = vor.u32 %v3153_v33, %v2463_v34  ;;  %v3177_v4 = vld [vmem:[#allocation2 + $0x38c] sm:$0xf] }
  0x8e   :  { %1471 = vmatpush.bf16.msrb.mxu3 %v2238_v48  ;;  %v3203_v48 = vld [vmem:[#allocation2 + $0x454] sm:$0xf0]  ;;  %v3237_v33 = vld [vmem:[#allocation2 + $0x56c] sm:$0xf]  ;;  %v2799_v34 = vld [vmem:[#allocation2 + $0x578] sm:$0xf0] }
  0x8f   :  { %1496 = vmatpush.bf16.msra.mxu2 %v2510_v39  ;;  %1484 = vmatpush.bf16.msra.mxu0 %v2366_v59  ;;  %v2178_v39 = vor.u32 %v3081_v29, %v2175_v31  ;;  %v2654_v58 = vor.u32 %v3203_v48, %v2653_v47  ;;  %v3073_v59 = vld [vmem:[#allocation2 + $0x4c] sm:$0xf]  ;;  %v2735_v29 = vld [vmem:[#allocation2 + $0x4f8] sm:$0xf0]  ;;  %v2610_v31 = vor.u32 %v3189_v18, %v2607_v20 }
  0x90   :  { %1503 = vmatpush.bf16.msra.mxu1 %v2734_v49  ;;  %v2306_v49 = vor.u32 %v3113_v40, %v2303_v41  ;;  %v2239_v40 = vld [vmem:[#allocation2 + $0x118] sm:$0xf0]  ;;  %v3241_v20 = vld [vmem:[#allocation2 + $0x58c] sm:$0xf] }
  0x91   :  { %1472 = vmatmul.bf16.vlgmr.msrb.gmra.mxu3 %v3447_v7  ;;  %1459 = vmatmul.bf16.vlgmr.msrb.gmra.mxu1 %v3438_v55  ;;  %v2719_v47 = vld [vmem:[#allocation2 + $0x4d8] sm:$0xf0] }
  0x92   :  { %1516 = vmatpush.bf16.msra.mxu3 %v2862_v54  ;;  %1485 = vmatmul.bf16.vlgmr.msra.gmra.mxu0 %v3436_v51  ;;  %v3109_v54 = vld [vmem:[#allocation2 + $0x16c] sm:$0xf]  ;;  %v2543_v18 = vld [vmem:[#allocation2 + $0x378] sm:$0xf0] }
  0x93   :  { %1497 = vmatpush.bf16.msra.mxu2 %v2494_v60  ;;  %1536 = vmatpush.bf16.msrb.mxu0 %v2878_v0  ;;  %v2143_v60 = vld [vmem:[#allocation2 + $0x58] sm:$0xf0]  ;;  %v2290_v0 = vor.u32 %v3109_v54, %v2287_v56  ;;  %v3181_v54 = vld [vmem:[#allocation2 + $0x3ac] sm:$0xf] }
  0x94   :  { %1504 = vmatpush.bf16.msra.mxu1 %v2718_v3  ;;  %v2146_v3 = vor.u32 %v3073_v59, %v2143_v60  ;;  %v2575_v56 = vld [vmem:[#allocation2 + $0x3b8] sm:$0xf0]  ;;  %v3249_v59 = vld [vmem:[#allocation2 + $0x5cc] sm:$0xf] }
  0x95   :  { %v2847_v60 = vld [vmem:[#allocation2 + $0x5d8] sm:$0xf0] }
  0x96   :  { %1517 = vmatpush.bf16.msra.mxu3 %v2846_v6  ;;  %1498 = vmatmul.bf16.vlgmr.msra.gmra.mxu2 %v3440_v57 }
  0x97   :  { %1542 = vmatpush.bf16.msrb.mxu2 %v2226_v63  ;;  %1555 = vmatpush.bf16.msra.mxu0 %v2354_v10  ;;  %v3199_v63 = vld [vmem:[#allocation2 + $0x434] sm:$0xf0]  ;;  %v2621_v10 = vld [vmem:[#allocation2 + $0x408] sm:$0xf] }
  0x98   :  { %1505 = vmatpush.bf16.msra.mxu1 %v2702_v16  ;;  %v2638_v6 = vor.u32 %v3199_v63, %v2637_v62  ;;  %v3157_v16 = vld [vmem:[#allocation2 + $0x2ec] sm:$0xf]  ;;  %v2622_v23 = vor.u32 %v3195_v12, %v2621_v10  ;;  %v2703_v63 = vld [vmem:[#allocation2 + $0x4b8] sm:$0xf0]  ;;  %v2434_v10 = vor.u32 %v3145_v1, %v2431_v2 }
  0x99   :  { %v2482_v27 = vor.u32 %v3157_v16, %v2479_v17  ;;  %v3213_v62 = vld [vmem:[#allocation2 + $0x4ac] sm:$0xf]  ;;  %v2687_v12 = vld [vmem:[#allocation2 + $0x498] sm:$0xf0] }
  0x9a   :  { %1518 = vmatpush.bf16.msra.mxu3 %v2830_v19  ;;  %v2130_v19 = vor.u32 %v3069_v8, %v2127_v9  ;;  %v3245_v8 = vld [vmem:[#allocation2 + $0x5ac] sm:$0xf]  ;;  %v2831_v9 = vld [vmem:[#allocation2 + $0x5b8] sm:$0xf0] }
  0x9b   :  { %1543 = vmatpush.bf16.msrb.mxu2 %v2210_v13  ;;  %1556 = vmatpush.bf16.msra.mxu0 %v2338_v22  ;;  %v2749_v13 = vld [vmem:[#allocation2 + $0x508] sm:$0xf]  ;;  %v2255_v22 = vld [vmem:[#allocation2 + $0x138] sm:$0xf0]  ;;  %v2834_v16 = vor.u32 %v3245_v8, %v2831_v9  ;;  %v3173_v17 = vld [vmem:[#allocation2 + $0x36c] sm:$0xf] }
  0x9c   :  { %1506 = vmatpush.bf16.msra.mxu1 %v2686_v28  ;;  %v2750_v26 = vor.u32 %v3227_v14, %v2749_v13  ;;  %v3221_v28 = vld [vmem:[#allocation2 + $0x4ec] sm:$0xf]  ;;  %v2562_v13 = vor.u32 %v3177_v4, %v2559_v5  ;;  %v2879_v2 = vld [vmem:[#allocation2 + $0x618] sm:$0xf0] }
  0x9d   :  { %v2738_v41 = vor.u32 %v3221_v28, %v2735_v29  ;;  %v3141_v14 = vld [vmem:[#allocation2 + $0x26c] sm:$0xf] }
  0x9e   :  { %1519 = vmatpush.bf16.msra.mxu3 %v2814_v32  ;;  %v2258_v32 = vor.u32 %v3101_v21, %v2255_v22  ;;  %v2815_v21 = vld [vmem:[#allocation2 + $0x598] sm:$0xf0]  ;;  %v3169_v29 = vld [vmem:[#allocation2 + $0x34c] sm:$0xf] }
  0x9f   :  { %1544 = vmatpush.bf16.msrb.mxu2 %v2194_v25  ;;  %1557 = vmatpush.bf16.msra.mxu0 %v2322_v36  ;;  %v2111_v25 = vld [vmem:[#allocation2 + $0x18] sm:$0xf0]  ;;  %v3185_v36 = vld [vmem:[#allocation2 + $0x3cc] sm:$0xf] }
  0xa0   :  { %1507 = vmatpush.bf16.msra.mxu1 %v2670_v42  ;;  %v2114_v37 = vor.u32 %v3065_v24, %v2111_v25  ;;  %v3253_v42 = vld [vmem:[#allocation2 + $0x5ec] sm:$0xf]  ;;  %v2594_v48 = vor.u32 %v3185_v36, %v2591_v38  ;;  %v2671_v24 = vld [vmem:[#allocation2 + $0x478] sm:$0xf0] }
  0xa1   :  { %v3137_v25 = vld [vmem:[#allocation2 + $0x24c] sm:$0xf] }
  0xa2   :  { %1520 = vmatpush.bf16.msra.mxu3 %v2798_v46  ;;  %2885 = vmatmul.msk.bf16.vlgmr.msrb.gmra.mxu0 %vm1265_vm0, %v3454_v45  ;;  %v3217_v46 = vld [vmem:[#allocation2 + $0x4cc] sm:$0xf] }
  0xa3   :  { %1545 = vmatpush.bf16.msrb.mxu2 %v2178_v39  ;;  %1558 = vmatpush.bf16.msra.mxu0 %v2306_v49  ;;  %v3097_v39 = vld [vmem:[#allocation2 + $0x10c] sm:$0xf] }
  0xa4   :  { %1508 = vmatpush.bf16.msra.mxu1 %v2654_v58  ;;  %v2242_v49 = vor.u32 %v3097_v39, %v2239_v40  ;;  %v2722_v58 = vor.u32 %v3217_v46, %v2719_v47  ;;  %v3201_v38 = vld [vmem:[#allocation2 + $0x44c] sm:$0xf]  ;;  %v2655_v39 = vld [vmem:[#allocation2 + $0x458] sm:$0xf0] }
  0xa5   :  { %v3165_v46 = vld [vmem:[#allocation2 + $0x32c] sm:$0xf]  ;;  %v2511_v47 = vld [vmem:[#allocation2 + $0x338] sm:$0xf0] }
  0xa6   :  { %1521 = vmatpush.bf16.msra.mxu3 %v2782_v61  ;;  %v2450_v61 = vor.u32 %v3149_v50, %v2447_v52  ;;  %v3233_v50 = vld [vmem:[#allocation2 + $0x54c] sm:$0xf]  ;;  %v2783_v52 = vld [vmem:[#allocation2 + $0x558] sm:$0xf0] }
  0xa7   :  { %1546 = vmatpush.bf16.msrb.mxu2 %v2162_v53  ;;  %1559 = vmatpush.bf16.msra.mxu0 %v2290_v0  ;;  %v2866_v53 = vor.u32 %v3253_v42, %v2863_v43  ;;  %v2578_v0 = vor.u32 %v3181_v54, %v2575_v56  ;;  %v3133_v42 = vld [vmem:[#allocation2 + $0x22c] sm:$0xf]  ;;  %v2383_v43 = vld [vmem:[#allocation2 + $0x238] sm:$0xf0] }
  0xa8   :  { %1509 = vmatpush.bf16.msra.mxu1 %v2638_v6  ;;  %v2706_v6 = vor.u32 %v3213_v62, %v2703_v63  ;;  %v2386_v54 = vor.u32 %v3133_v42, %v2383_v43  ;;  %v3197_v56 = vld [vmem:[#allocation2 + $0x42c] sm:$0xf]  ;;  %v2786_v63 = vor.u32 %v3233_v50, %v2783_v52  ;;  %v3270_v42 = vld [vmem:[#allocation4 + $0x50] sm:$0xff]  ;;  %v3268_v50 = vld [vmem:[#allocation4 + $0x40] sm:$0xff] }
  0xa9   :  { %v3161_v62 = vld [vmem:[#allocation2 + $0x30c] sm:$0xf] }
  0xaa   :  { %1522 = vmatpush.bf16.msra.mxu3 %v2766_v11  ;;  %v3209_v11 = vld [vmem:[#allocation2 + $0x48c] sm:$0xf] }
  0xab   :  { %1547 = vmatpush.bf16.msrb.mxu2 %v2146_v3  ;;  %1560 = vmatpush.bf16.msra.mxu0 %v2274_v15  ;;  %v2850_v3 = vor.u32 %v3249_v59, %v2847_v60  ;;  %v2415_v15 = vld [vmem:[#allocation2 + $0x278] sm:$0xf0]  ;;  %v2514_v59 = vor.u32 %v3165_v46, %v2511_v47  ;;  %v3129_v60 = vld [vmem:[#allocation2 + $0x20c] sm:$0xf]  ;;  %v3260_v47 = vld [vmem:[#allocation4] sm:$0xff] }
  0xac   :  { %1510 = vmatpush.bf16.msra.mxu1 %v2622_v23  ;;  %v2418_v22 = vor.u32 %v3141_v14, %v2415_v15  ;;  %v3205_v23 = vld [vmem:[#allocation2 + $0x46c] sm:$0xf]  ;;  %v3490_v28 = vpop.f32.mrf.mxu1 }
  0xad   :  { %v3257_v1 = vld [vmem:[#allocation2 + $0x60c] sm:$0xf] }
  0xae   :  { %1523 = vmatpush.bf16.msra.mxu3 %v2750_v26  ;;  %v2399_v26 = vld [vmem:[#allocation2 + $0x258] sm:$0xf0]  ;;  %v3229_v5 = vld [vmem:[#allocation2 + $0x52c] sm:$0xf]  ;;  %v2882_v14 = vor.u32 %v3257_v1, %v2879_v2 }
  0xaf   :  { %1548 = vmatpush.bf16.msrb.mxu2 %v2130_v19  ;;  %1561 = vmatpush.bf16.msra.mxu0 %v2258_v32  ;;  %v3488_v19 = vpop.f32.mrf.mxu0  ;;  %v2674_v32 = vor.u32 %v3205_v23, %v2671_v24  ;;  %v3266_v23 = vld [vmem:[#allocation4 + $0x30] sm:$0xff]  ;;  %v3269_v46 = vld [vmem:[#allocation4 + $0x48] sm:$0xff]  ;;  %v3283_v1 = vld [vmem:[#allocation4 + $0xb8] sm:$0xff] }
  0xb0   :  { %1568 = vmatpush.bf16.msrb.mxu1 %v2482_v27  ;;  %v2818_v27 = vor.u32 %v3241_v20, %v2815_v21  ;;  %v2751_v20 = vld [vmem:[#allocation2 + $0x518] sm:$0xf0] }
  0xb1   :  { %1511 = vmatmul.bf16.vlgmr.msra.gmra.mxu1 %v3464_v30  ;;  %1524 = vmatmul.bf16.vlgmr.msra.gmra.mxu3 %v3466_v35  ;;  %v3275_v21 = vld [vmem:[#allocation4 + $0x78] sm:$0xff] }
  0xb2   :  { %1581 = vmatpush.bf16.msrb.mxu3 %v2610_v31  ;;  %v2527_v31 = vld [vmem:[#allocation2 + $0x358] sm:$0xf0] }
  0xb3   :  { %1549 = vmatpush.bf16.msrb.mxu2 %v2114_v37  ;;  %1562 = vmatpush.bf16.msra.mxu0 %v2242_v49  ;;  %v2402_v37 = vor.u32 %v3137_v25, %v2399_v26  ;;  %v2530_v40 = vor.u32 %v3169_v29, %v2527_v31  ;;  %v2658_v49 = vor.u32 %v3201_v38, %v2655_v39  ;;  %v3274_v25 = vld [vmem:[#allocation4 + $0x70] sm:$0xff] }
  0xb4   :  { %1569 = vmatpush.bf16.msrb.mxu1 %v2466_v44  ;;  %v3492_v36 = vpop.f32.mrf.mxu2  ;;  %v2802_v44 = vor.u32 %v3237_v33, %v2799_v34  ;;  %v3272_v33 = vld [vmem:[#allocation4 + $0x60] sm:$0xff]  ;;  %v3263_v34 = vld [vmem:[#allocation4 + $0x18] sm:$0xff]  ;;  %v3262_v38 = vld [vmem:[#allocation4 + $0x10] sm:$0xff] }
  0xb6   :  { %1582 = vmatpush.bf16.msrb.mxu3 %v2594_v48  ;;  %1550 = vmatmul.bf16.vlgmr.msrb.gmra.mxu2 %v3438_v55  ;;  %v2690_v55 = vor.u32 %v3209_v11, %v2687_v12  ;;  %v2623_v11 = vld [vmem:[#allocation2 + $0x418] sm:$0xf0] }
  0xb7   :  { %1594 = vmatpush.bf16.msra.mxu2 %v2738_v41  ;;  %1607 = vmatpush.bf16.msrb.mxu0 %v2866_v53  ;;  %v3494_v41 = vpop.f32.mrf.mxu3  ;;  %v1280_v48 = vpop.f32.mrf.mxu0  ;;  %v3499_v53 = vld [vmem:[%s3565_s2] sm:$0xf] }
  0xb8   :  { %1570 = vmatpush.bf16.msrb.mxu1 %v2450_v61  ;;  %1563 = vmatmul.bf16.vlgmr.msra.gmra.mxu0 %v3447_v7  ;;  %v2546_v7 = vor.u32 %v3173_v17, %v2543_v18  ;;  %v2367_v61 = vld [vmem:[#allocation2 + $0x218] sm:$0xf0]  ;;  %v277_v12 = vperm.slane %v3499_v53, 0 }
  0xb9   :  { %v2370_v9 = vor.u32 %v3129_v60, %v2367_v61 }
  0xba   :  { %1583 = vmatpush.bf16.msrb.mxu3 %v2578_v0  ;;  %v2495_v0 = vld [vmem:[#allocation2 + $0x318] sm:$0xf0] }
  0xbb   :  { %1595 = vmatpush.bf16.msra.mxu2 %v2722_v58  ;;  %1608 = vmatpush.bf16.msrb.mxu0 %v2850_v3  ;;  %v2639_v58 = vld [vmem:[#allocation2 + $0x438] sm:$0xf0]  ;;  %v1293_v3 = vpop.f32.mrf.mxu1 }
  0xbc   :  { %1571 = vmatpush.bf16.msrb.mxu1 %v2434_v10  ;;  %v2642_v4 = vor.u32 %v3197_v56, %v2639_v58  ;;  %v1306_v8 = vpop.f32.mrf.mxu2  ;;  %v3193_v10 = vld [vmem:[#allocation2 + $0x40c] sm:$0xf] }
  0xbd   :  { %v2626_v18 = vor.u32 %v3193_v10, %v2623_v11  ;;  %v3281_v8 = vld [vmem:[#allocation4 + $0xa8] sm:$0xff] }
  0xbe   :  { %1584 = vmatpush.bf16.msrb.mxu3 %v2562_v13  ;;  %v2498_v13 = vor.u32 %v3161_v62, %v2495_v0 }
  0xbf   :  { %1596 = vmatpush.bf16.msra.mxu2 %v2706_v6  ;;  %1609 = vmatpush.bf16.msrb.mxu0 %v2834_v16  ;;  %v2767_v6 = vld [vmem:[#allocation2 + $0x538] sm:$0xf0]  ;;  %v1319_v15 = vpop.f32.mrf.mxu3 }
  0xc0   :  { %1572 = vmatpush.bf16.msrb.mxu1 %v2418_v22  ;;  %v3267_v16 = vld [vmem:[#allocation4 + $0x38] sm:$0xff]  ;;  %v2770_v17 = vor.u32 %v3229_v5, %v2767_v6  ;;  %v1279_v22 = vadd.f32 %v3488_v19, %v277_v12  ;;  %v3265_v19 = vld [vmem:[#allocation4 + $0x28] sm:$0xff] }
  0xc2   :  { %1585 = vmatpush.bf16.msrb.mxu3 %v2546_v7  ;;  %v1292_v26 = vadd.f32 %v3490_v28, %v1279_v22 }
  0xc3   :  { %1597 = vmatpush.bf16.msra.mxu2 %v2690_v55  ;;  %1610 = vmatpush.bf16.msrb.mxu0 %v2818_v27  ;;  %v3225_v55 = vld [vmem:[#allocation2 + $0x50c] sm:$0xf] }
  0xc4   :  { %1573 = vmatpush.bf16.msrb.mxu1 %v2402_v37  ;;  %v2754_v24 = vor.u32 %v3225_v55, %v2751_v20  ;;  %v1356_v7 = vpop.f32.mrf.mxu2  ;;  %v3273_v27 = vld [vmem:[#allocation4 + $0x68] sm:$0xff]  ;;  %v1305_v29 = vadd.f32 %v3492_v36, %v1292_v26  ;;  %v3271_v37 = vld [vmem:[#allocation4 + $0x58] sm:$0xff] }
  0xc5   :  { %v3291_v26 = vld [vmem:[#allocation4 + $0xf8] sm:$0xff] }
  0xc6   :  { %1586 = vmatpush.bf16.msrb.mxu3 %v2530_v40  ;;  %v1318_v28 = vadd.f32 %v3494_v41, %v1305_v29  ;;  %v279_v29 = vperm.slane %v3499_v53, 2 }
  0xc7   :  { %1598 = vmatpush.bf16.msra.mxu2 %v2674_v32  ;;  %1611 = vmatpush.bf16.msrb.mxu0 %v2802_v44  ;;  %v3261_v44 = vld [vmem:[#allocation4 + $0x8] sm:$0xff] }
  0xc8   :  { %1574 = vmatpush.bf16.msrb.mxu1 %v2386_v54 }
  0xca   :  { %1587 = vmatpush.bf16.msrb.mxu3 %v2514_v59 }
  0xcb   :  { %1599 = vmatpush.bf16.msra.mxu2 %v2658_v49  ;;  %1612 = vmatpush.bf16.msrb.mxu0 %v2786_v63  ;;  %v1330_v31 = vpop.f32.mrf.mxu0 }
  0xcc   :  { %1575 = vmatpush.bf16.msrb.mxu1 %v2370_v9  ;;  %v1358_v32 = vpop.f32.mrf.mxu2 }
  0xce   :  { %1588 = vmatpush.bf16.msrb.mxu3 %v2498_v13  ;;  %v3280_v13 = vld [vmem:[#allocation4 + $0xa0] sm:$0xff] }
  0xcf   :  { %1600 = vmatpush.bf16.msra.mxu2 %v2642_v4  ;;  %1613 = vmatpush.bf16.msrb.mxu0 %v2770_v17  ;;  %v3282_v4 = vld [vmem:[#allocation4 + $0xb0] sm:$0xff]  ;;  %v3279_v17 = vld [vmem:[#allocation4 + $0x98] sm:$0xff] }
  0xd0   :  { %1627 = vmatpush.bf16.msra.mxu1 %v2882_v14 }
  0xd1   :  { %1576 = vmatmul.bf16.vlgmr.msrb.gmra.mxu1 %v3436_v51  ;;  %1589 = vmatmul.bf16.vlgmr.msrb.gmra.mxu3 %v3440_v57  ;;  %v3264_v51 = vld [vmem:[#allocation4 + $0x20] sm:$0xff]  ;;  %v1343_v57 = vpop.f32.mrf.mxu1 }
  0xd2   :  { %1901 = vmatpush.bf16.msra.mxu3 %v3267_v16 }
  0xd3   :  { %1601 = vmatpush.bf16.msra.mxu2 %v2626_v18  ;;  %1614 = vmatpush.bf16.msrb.mxu0 %v2754_v24  ;;  %v3278_v18 = vld [vmem:[#allocation4 + $0x90] sm:$0xff] }
  0xd4   :  { %1914 = vmatpush.bf16.msrb.mxu1 %v3275_v21  ;;  %v1369_v36 = vpop.f32.mrf.mxu3  ;;  %v3277_v21 = vld [vmem:[#allocation4 + $0x88] sm:$0xff] }
  0xd6   :  { %1902 = vmatpush.bf16.msra.mxu3 %v3266_v23  ;;  %1602 = vmatmul.bf16.vlgmr.msra.gmra.mxu2 %v3464_v30  ;;  %v1331_v30 = vadd.f32 %v1330_v31, %v1318_v28  ;;  %v3276_v23 = vld [vmem:[#allocation4 + $0x80] sm:$0xff] }
  0xd7   :  { %1615 = vmatmul.bf16.vlgmr.msrb.gmra.mxu0 %v3466_v35  ;;  %v1332_v35 = vpop.f32.mrf.mxu0  ;;  %1927 = vmatpush.bf16.msrb.mxu2 %v3283_v1 }
  0xd8   :  { %1915 = vmatpush.bf16.msrb.mxu1 %v3274_v25  ;;  %v1344_v39 = vadd.f32 %v1343_v57, %v1331_v30  ;;  %1940 = vmatpush.bf16.msra.mxu0 %v3291_v26 }
  0xd9   :  { %v1345_v40 = vpop.f32.mrf.mxu1  ;;  %v1382_v43 = vpop.f32.mrf.mxu2 }
  0xda   :  { %1903 = vmatpush.bf16.msra.mxu3 %v3265_v19  ;;  %v1357_v41 = vadd.f32 %v1356_v7, %v1344_v39  ;;  %v3290_v19 = vld [vmem:[#allocation4 + $0xf0] sm:$0xff]  ;;  %v3287_v39 = vld [vmem:[#allocation4 + $0xd8] sm:$0xff] }
  0xdb   :  { %1928 = vmatpush.bf16.msrb.mxu2 %v3282_v4 }
  0xdc   :  { %1916 = vmatpush.bf16.msrb.mxu1 %v3273_v27  ;;  %v1633_v48 = vmax.f32 %v1357_v41, 0.0  ;;  %v1371_v49 = vpop.f32.mrf.mxu3  ;;  %1941 = vmatpush.bf16.msra.mxu0 %v3290_v19  ;;  %v3292_v19 = vld [vmem:[%s3568_s5] sm:$0xff] }
  0xde   :  { %1904 = vmatpush.bf16.msra.mxu3 %v3264_v51  ;;  %v1637_v54 = vpack.c.bf16 %v1633_v48, %v1633_v48  ;;  %v3285_v48 = vld [vmem:[#allocation4 + $0xc8] sm:$0xff] }
  0xdf   :  { %1929 = vmatpush.bf16.msrb.mxu2 %v3281_v8 }
  0xe0   :  { %1917 = vmatpush.bf16.msrb.mxu1 %v3272_v33  ;;  %v3289_v33 = vld [vmem:[#allocation4 + $0xe8] sm:$0xff] }
  0xe1   :  { %2886 = vmatmul.msk.bf16.vlgmr.msra.gmra.mxu1 %vm1265_vm0, %v3454_v45  ;;  %v1384_v52 = vpop.f32.mrf.mxu2  ;;  %v278_v45 = vperm.slane %v3499_v53, 1  ;;  %1942 = vmatpush.bf16.msra.mxu0 %v3289_v33 }
  0xe2   :  { %1905 = vmatpush.bf16.msra.mxu3 %v3263_v34  ;;  %v3288_v34 = vld [vmem:[#allocation4 + $0xe0] sm:$0xff] }
  0xe3   :  { %v1370_v56 = vadd.f32 %v1369_v36, %v278_v45  ;;  %1930 = vmatpush.bf16.msrb.mxu2 %v3280_v13  ;;  %v3284_v45 = vld [vmem:[#allocation4 + $0xc0] sm:$0xff] }
  0xe4   :  { %1918 = vmatpush.bf16.msrb.mxu1 %v3271_v37 }
  0xe5   :  { %v1383_v58 = vadd.f32 %v1382_v43, %v1370_v56  ;;  %1943 = vmatpush.bf16.msra.mxu0 %v3288_v34  ;;  %v280_v56 = vperm.slane %v3499_v53, 3 }
  0xe6   :  { %1906 = vmatpush.bf16.msra.mxu3 %v3262_v38 }
  0xe7   :  { %1931 = vmatpush.bf16.msrb.mxu2 %v3279_v17 }
  0xe8   :  { %1919 = vmatpush.bf16.msrb.mxu1 %v3270_v42  ;;  %v3286_v42 = vld [vmem:[#allocation4 + $0xd0] sm:$0xff] }
  0xe9   :  { %1944 = vmatpush.bf16.msra.mxu0 %v3287_v39 }
  0xea   :  { %1907 = vmatpush.bf16.msra.mxu3 %v3261_v44 }
  0xeb   :  { %v1395_v59 = vpop.f32.mrf.mxu0  ;;  %1932 = vmatpush.bf16.msrb.mxu2 %v3278_v18 }
  0xec   :  { %1920 = vmatpush.bf16.msrb.mxu1 %v3269_v46  ;;  %v1396_v60 = vadd.f32 %v1395_v59, %v1383_v58 }
  0xed   :  { %1945 = vmatpush.bf16.msra.mxu0 %v3286_v42 }
  0xee   :  { %1908 = vmatpush.bf16.msra.mxu3 %v3260_v47  ;;  %v1408_v61 = vpop.f32.mrf.mxu1 }
  0xef   :  { %v1409_v62 = vadd.f32 %v1408_v61, %v1396_v60  ;;  %1933 = vmatpush.bf16.msrb.mxu2 %v3277_v21  ;;  %v3298_v21 = vld [vmem:[%s3568_s5 + $0x30] sm:$0xff] }
  0xf0   :  { %1921 = vmatpush.bf16.msrb.mxu1 %v3268_v50 }
  0xf1   :  { %1909 = vmatmul.bf16.vlgmr.msra.gmra.mxu3 %v1637_v54  ;;  %1946 = vmatpush.bf16.msra.mxu0 %v3285_v48 }
  0xf3   :  { %v1397_v63 = vpop.f32.mrf.mxu0  ;;  %1934 = vmatpush.bf16.msrb.mxu2 %v3276_v23  ;;  %v3296_v23 = vld [vmem:[%s3568_s5 + $0x20] sm:$0xff] }
  0xf4   :  { %v1421_v0 = vpop.f32.mrf.mxu3 }
  0xf5   :  { %v1422_v2 = vadd.f32 %v1421_v0, %v1409_v62  ;;  %1947 = vmatpush.bf16.msra.mxu0 %v3284_v45 }
  0xf6   :  { %v1410_v5 = vpop.f32.mrf.mxu1 }
  0xf9   :  { %v1434_v3 = vpop.f32.mrf.mxu2 }
  0xfa   :  { %v1435_v6 = vadd.f32 %v1434_v3, %v1422_v2 }
  0xfb   :  { %v1447_v9 = vpop.f32.mrf.mxu0 }
  0xfc   :  { %v1423_v10 = vpop.f32.mrf.mxu3  ;;  %v1448_v11 = vadd.f32 %v1447_v9, %v1435_v6 }
  0xfe   :  { %v1634_v14 = vmax.f32 %v1448_v11, 0.0 }
 0x100   :  { %v1638_v15 = vpack.c.bf16 %v1634_v14, %v1634_v14 }
 0x101   :  { %v1436_v12 = vpop.f32.mrf.mxu2 }
 0x102   :  { %1922 = vmatmul.bf16.vlgmr.msrb.gmra.mxu1 %v1638_v15  ;;  %v3310_v15 = vld [vmem:[%s3567_s4] ss:$0 sm:$0xff] }
 0x103   :  { %v1449_v16 = vpop.f32.mrf.mxu0 }
 0x10e   :  { %v1460_v20 = vpop.f32.mrf.mxu1 }
 0x10f   :  { %v1486_v55 = vpop.f32.mrf.mxu0  ;;  %v1461_v57 = vadd.f32 %v1460_v20, %v279_v29  ;;  %v3299_v20 = vld [vmem:[%s3568_s5 + $0x38] sm:$0xff] }
 0x110   :  { %2023 = vmatpush.bf16.msrb.mxu3 %v3299_v20 }
 0x114   :  { %v1473_v22 = vpop.f32.mrf.mxu3  ;;  %2024 = vmatpush.bf16.msrb.mxu3 %v3298_v21 }
 0x115   :  { %v1474_v32 = vadd.f32 %v1473_v22, %v1461_v57  ;;  %v3297_v22 = vld [vmem:[%s3568_s5 + $0x28] sm:$0xff] }
 0x116   :  { %v1462_v25 = vpop.f32.mrf.mxu1 }
 0x117   :  { %v1488_v24 = vpop.f32.mrf.mxu0  ;;  %v1487_v30 = vadd.f32 %v1486_v55, %v1474_v32  ;;  %v3293_v25 = vld [vmem:[%s3568_s5 + $0x8] sm:$0xff] }
 0x118   :  { %2025 = vmatpush.bf16.msrb.mxu3 %v3297_v22  ;;  %v3295_v24 = vld [vmem:[%s3568_s5 + $0x18] sm:$0xff] }
 0x119   :  { %v1499_v7 = vpop.f32.mrf.mxu2 }
 0x11a   :  { %v1500_v38 = vadd.f32 %v1499_v7, %v1487_v30  ;;  %v3294_v7 = vld [vmem:[%s3568_s5 + $0x10] sm:$0xff] }
 0x11c   :  { %v1475_v27 = vpop.f32.mrf.mxu3  ;;  %2026 = vmatpush.bf16.msrb.mxu3 %v3296_v23 }
 0x11d   :  { %v3303_v27 = vld [vmem:[%s3570_s7 + $0x18] sm:$0xff] }
 0x11e   :  { %2082 = vmatpush.bf16.msra.mxu1 %v3303_v27 }
 0x11f   :  { %v1538_v51 = vpop.f32.mrf.mxu0 }
 0x120   :  { %2027 = vmatpush.bf16.msrb.mxu3 %v3295_v24 }
 0x121   :  { %v1501_v31 = vpop.f32.mrf.mxu2 }
 0x122   :  { %v3301_v31 = vld [vmem:[%s3570_s7 + $0x8] sm:$0xff] }
 0x124   :  { %2028 = vmatpush.bf16.msrb.mxu3 %v3294_v7 }
 0x127   :  { %v1540_v28 = vpop.f32.mrf.mxu0 }
 0x128   :  { %2029 = vmatpush.bf16.msrb.mxu3 %v3293_v25 }
 0x12c   :  { %2030 = vmatpush.bf16.msrb.mxu3 %v3292_v19 }
 0x12e   :  { %v1512_v37 = vpop.f32.mrf.mxu1 }
 0x12f   :  { %v1513_v35 = vadd.f32 %v1512_v37, %v1500_v38  ;;  %v3300_v37 = vld [vmem:[%s3570_s7] sm:$0xff] }
 0x130   :  { %v3311_v38 = vld [vmem:[%s3569_s6] ss:$0 sm:$0xff] }
 0x134   :  { %v1525_v40 = vpop.f32.mrf.mxu3 }
 0x135   :  { %v1564_v36 = vpop.f32.mrf.mxu0  ;;  %v1526_v43 = vadd.f32 %v1525_v40, %v1513_v35 }
 0x136   :  { %v1514_v44 = vpop.f32.mrf.mxu1 }
 0x137   :  { %v1539_v41 = vadd.f32 %v1538_v51, %v1526_v43  ;;  %v3302_v51 = vld [vmem:[%s3570_s7 + $0x10] sm:$0xff]  ;;  %v3312_v43 = vld [vmem:[%s3571_s8] ss:$0 sm:$0xff] }
 0x138   :  { %2083 = vmatpush.bf16.msra.mxu1 %v3302_v51 }
 0x139   :  { %v1551_v46 = vpop.f32.mrf.mxu2  ;;  %v1635_v47 = vmax.f32 %v1539_v41, 0.0 }
 0x13a   :  { %v1552_v58 = vadd.f32 %v1551_v46, %v280_v56 }
 0x13b   :  { %v1639_v49 = vpack.c.bf16 %v1635_v47, %v1635_v47 }
 0x13c   :  { %v1527_v52 = vpop.f32.mrf.mxu3  ;;  %v1565_v60 = vadd.f32 %v1564_v36, %v1552_v58  ;;  %2084 = vmatpush.bf16.msra.mxu1 %v3301_v31 }
 0x13d   :  { %v1566_v50 = vpop.f32.mrf.mxu0  ;;  %1935 = vmatmul.bf16.vlgmr.msrb.gmra.mxu2 %v1639_v49 }
 0x140   :  { %2085 = vmatpush.bf16.msra.mxu1 %v3300_v37 }
 0x141   :  { %v1553_v54 = vpop.f32.mrf.mxu2 }
 0x14e   :  { %v1577_v59 = vpop.f32.mrf.mxu1 }
 0x14f   :  { %v1578_v61 = vadd.f32 %v1577_v59, %v1565_v60 }
 0x154   :  { %v1590_v62 = vpop.f32.mrf.mxu3  ;;  %v1616_v63 = vpop.f32.mrf.mxu0 }
 0x155   :  { %v1591_v0 = vadd.f32 %v1590_v62, %v1578_v61 }
 0x156   :  { %v1579_v1 = vpop.f32.mrf.mxu1 }
 0x159   :  { %v1603_v2 = vpop.f32.mrf.mxu2 }
 0x15a   :  { %v1604_v3 = vadd.f32 %v1603_v2, %v1591_v0 }
 0x15c   :  { %v1592_v4 = vpop.f32.mrf.mxu3  ;;  %v1618_v5 = vpop.f32.mrf.mxu0  ;;  %v1617_v6 = vadd.f32 %v1616_v63, %v1604_v3 }
 0x15e   :  { %v1629_v8 = vpop.f32.mrf.mxu1 }
 0x15f   :  { %v1630_v9 = vadd.f32 %v1629_v8, %v1617_v6 }
 0x161   :  { %v1605_v10 = vpop.f32.mrf.mxu2  ;;  %v1636_v11 = vmax.f32 %v1630_v9, 0.0 }
 0x163   :  { %v1640_v12 = vpack.c.bf16 %v1636_v11, %v1636_v11 }
 0x165   :  { %1948 = vmatmul.bf16.vlgmr.msra.gmra.mxu0 %v1640_v12 }
 0x166   :  { %v1631_v53 = vpop.f32.mrf.mxu1 }
 0x174   :  { %v1910_v13 = vpop.f32.mrf.mxu3 }
 0x175   :  { %v1911_v16 = vadd.f32 %v3310_v15, %v1910_v13 }
 0x17c   :  { %v1912_v14 = vpop.f32.mrf.mxu3 }
 0x17f   :  { %v1923_v17 = vpop.f32.mrf.mxu1 }
 0x180   :  { %v1924_v18 = vadd.f32 %v1923_v17, %v1911_v16 }
 0x187   :  { %v1925_v55 = vpop.f32.mrf.mxu1 }
 0x1c0   :  { %v1936_v26 = vpop.f32.mrf.mxu2 }
 0x1c1   :  { %v1937_v57 = vadd.f32 %v1936_v26, %v1924_v18 }
 0x1c8   :  { %v1938_v29 = vpop.f32.mrf.mxu2 }
 0x1e2   :  { %v1949_v32 = vpop.f32.mrf.mxu0 }
 0x1e3   :  { %v1950_v33 = vadd.f32 %v1949_v32, %v1937_v57 }
 0x1e5   :  { %v1953_v28 = vmax.f32 %v1950_v33, 0.0 }
 0x1e7   :  { %v1954_v34 = vpack.c.bf16 %v1953_v28, %v1953_v28 }
 0x1e9   :  { %2031 = vmatmul.bf16.vlgmr.msrb.gmra.mxu3 %v1954_v34 }
 0x1ea   :  { %v1951_v30 = vpop.f32.mrf.mxu0 }
 0x26c   :  { %v2032_v39 = vpop.f32.mrf.mxu3 }
 0x26d   :  { %v2033_v35 = vadd.f32 %v3311_v38, %v2032_v39 }
 0x26f   :  { %v2036_v36 = vmax.f32 %v2033_v35, 0.0 }
 0x271   :  { %v2037_v40 = vpack.c.bf16 %v2036_v36, %v2036_v36 }
 0x273   :  { %3063 = vmatmul.msk.bf16.vlgmr.msra.gmra.mxu1 %vm2074_vm1, %v2037_v40 }
 0x274   :  { %v2034_v42 = vpop.f32.mrf.mxu3 }
 0x2f0   :  { %v2087_v44 = vpop.f32.mrf.mxu1 }
 0x2f1   :  { %v2088_v41 = vadd.f32 %v3312_v43, %v2087_v44 }
 0x2f3   :  { %v2091_v46 = vpack.c.bf16 %v2088_v41, %v2088_v41 }
 0x2f5   :  { %2092 = vst [vmem:[%s3572_s9] sm:$0xf] %v2091_v46 }
 0x2f8   :  { %v2089_v47 = vpop.f32.mrf.mxu1 }
 0x2f9   :  { %2097 = vsyncpa [#allocation3], 1 }
 0x2fa   :  { %2098 = vsyncpa [#allocation5], 1 }

</bundles_post_ra>
